<compile_context>
chip_gen: v7x
topology: tpu7x:2x2x1
jax: 0.10.0
libtpu: 0.0.40
codegen_flags: <defaults>
</compile_context>

<pallas_src>
import math

import jax
import jax.numpy as jnp
import numpy as np
from jax import lax
from jax.experimental import pallas as pl
from jax.experimental.pallas import tpu as pltpu

# ----------------------------- model dimensions ----------------------------
N = 2            # batch
C = 4            # num_channel (EEG electrodes)
T = 128          # time samples
F1 = 8
D = 2
F2 = F1 * D      # 16
F1D = F1 * D     # 16

K1 = 64                                   # temporal kernel of conv2d_m1_m2
PAD1 = K1 // 2                            # 32
W1 = ((T + 2 * PAD1 - K1 + 1) // 4) * 4   # 128 (conv1 width 129 truncated to what pool1 uses)
P1 = W1 // 4                              # 32
K2 = 16                                   # temporal kernel of deepwise_conv2d_2
PAD2 = K2 // 2                            # 8
WPAD2 = P1 + 2 * PAD2                     # 48
W2 = ((WPAD2 - K2 + 1) // 8) * 8          # 32  (conv2 width 33 truncated to what pool2 uses)
P2 = W2 // 8                              # 4

NR_IN = N * C                             # 8   input rows (batch folded)
NR_MID = N * F1D                          # 32  rows after depthwise
NR_OUT = N * F2                           # 32  rows after pointwise

BN_EPS = 1e-3
BN_SCALE = 1.0 / math.sqrt(1.0 + BN_EPS)  # gamma=1, beta=0, mean=0, var=1
BN_SCALE2 = BN_SCALE * BN_SCALE


# ------------------------------- Pallas kernel ------------------------------
def eegnet_kernel(x_ref, toe1_ref, wd_ref, pool1_ref, w2e_ref, wpw_ref,
                  pool2_ref, out_ref):
    # x_ref: (N*C, T) bf16 raw input (batch folded into rows; conv1's zero
    # padding is folded into the Toeplitz matrix, so no padded columns here).
    xp = x_ref[...]

    # conv2d_m1_m2: temporal conv with all F1 filters as ONE bf16 MXU matmul
    # against the padding-trimmed Toeplitz matrix (contraction depth = 128).
    # y1[n*C+c, f*W1+t] = sum_k w1[f,k] * x[n,c, t+k-PAD1]   (zero outside)
    y1 = jnp.dot(xp, toe1_ref[...], preferred_element_type=jnp.float32)      # (N*C, F1*W1) f32

    # deepwise_conv2d_m2 (spatial, grouped) + the (c,f1)->(o) reorder, as F1
    # accumulating block matmuls against per-filter block-diagonal matrices.
    # (Collapsing into a single dot needs an in-kernel relayout; rated
    #  low-priority by the review since the kernel is DMA/latency bound.)
    y2 = jnp.zeros((NR_MID, W1), jnp.float32)
    for f1 in range(F1):
        y2 = y2 + jnp.dot(wd_ref[f1], y1[:, f1 * W1:(f1 + 1) * W1],
                          preferred_element_type=jnp.float32)                # (N*F1D, W1)

    # batch_norm + batch_norm_2 (eval) = scalar scale, then ELU (f32 VPU/EUP).
    y2 = y2 * BN_SCALE2
    y2 = jnp.where(y2 > 0, y2, jnp.exp(y2) - 1.0)

    # avg_pool (1,4) + zero padding (8 each side) for the grouped conv, fused
    # into one constant matmul.  dropout: identity (eval).
    y3 = jnp.dot(y2, pool1_ref[...], preferred_element_type=jnp.float32)     # (N*F1D, WPAD2)

    # deepwise_conv2d_2: per-channel temporal conv (1,16), short unrolled
    # shift-and-accumulate on a lane-aligned width-32 output (f32 VPU).
    w2e = w2e_ref[...]                                                       # (N*F1D, K2) f32
    acc = jnp.zeros((NR_MID, W2), jnp.float32)
    for k in range(K2):
        acc = acc + w2e[:, k:k + 1] * y3[:, k:k + W2]

    # elemwise_conv2d: 1x1 pointwise conv = block-diag (over batch) matmul.
    y5 = jnp.dot(wpw_ref[...], acc, preferred_element_type=jnp.float32)      # (N*F2, W2)

    # batch_norm_3 (eval) scalar scale + ELU.
    y5 = y5 * BN_SCALE
    y5 = jnp.where(y5 > 0, y5, jnp.exp(y5) - 1.0)

    # avg_pool_2 (1,8); dropout: identity (eval).
    out_ref[...] = jnp.dot(y5, pool2_ref[...], preferred_element_type=jnp.float32)


# ------------------------------ parameter setup -----------------------------
def xavier_uniform(key, shape):
    # torch conv weight shape (O, I/groups, kH, kW); xavier gain=1.
    fan_out = shape[0] * shape[2] * shape[3]
    fan_in = shape[1] * shape[2] * shape[3]
    bound = math.sqrt(6.0 / (fan_in + fan_out))
    return jax.random.uniform(key, shape, jnp.float32, -bound, bound)


def build_params(key):
    k1, k2, k3, k4 = jax.random.split(key, 4)

    w1_full = xavier_uniform(k1, (F1, 1, 1, K1))             # conv2d_m1_m2
    wd_full = xavier_uniform(k2, (F1D, 1, C, 1))             # depthwise spatial
    # Conv2dWithConstraint: renorm per output channel to max L2 norm 1.
    norms = jnp.sqrt(jnp.sum(wd_full ** 2, axis=(1, 2, 3), keepdims=True))
    wd_full = wd_full * jnp.where(norms > 1.0, 1.0 / (norms + 1e-7), 1.0)
    w2_full = xavier_uniform(k3, (F2, 1, 1, K2))             # deepwise_conv2d_2
    wpw_full = xavier_uniform(k4, (F2, F2, 1, 1))            # elemwise_conv2d 1x1

    w1 = np.asarray(w1_full[:, 0, 0, :])                     # (F1, K1)
    wd = np.asarray(wd_full[:, 0, :, 0])                     # (F1D, C)
    w2 = np.asarray(w2_full[:, 0, 0, :])                     # (F2, K2)
    wpw = np.asarray(wpw_full[:, :, 0, 0])                   # (F2, F2)

    # Toeplitz matrix for conv1 with the zero padding folded in (only the T
    # valid input rows): toe1[t+k-PAD1, f*W1+t] = w1[f,k] iff 0 <= t+k-PAD1 < T.
    toe1 = np.zeros((T, F1, W1), np.float32)
    t_idx = np.arange(W1)
    for k in range(K1):
        tau = t_idx + k - PAD1
        valid = (tau >= 0) & (tau < T)
        toe1[tau[valid], :, t_idx[valid]] = w1[:, k][None, :]
    toe1 = toe1.reshape(T, F1 * W1)

    # Per-filter depthwise block matrices, block-diagonal over the batch:
    # wdstack[f1, n*F1D + f1*D + d, n*C + c] = wd[f1*D+d, c].
    wdstack = np.zeros((F1, NR_MID, NR_IN), np.float32)
    for f1 in range(F1):
        for n in range(N):
            for d in range(D):
                o = f1 * D + d
                wdstack[f1, n * F1D + o, n * C:(n + 1) * C] = wd[o]

    # AvgPool (1,4) fused with zero padding of PAD2 each side for conv2.
    pool1pad = np.zeros((W1, WPAD2), np.float32)
    for p in range(P1):
        pool1pad[4 * p:4 * p + 4, PAD2 + p] = 0.25

    # Grouped temporal conv weights expanded to the folded-batch rows.
    w2e = np.tile(w2, (N, 1))                                 # (N*F1D, K2)

    # Pointwise 1x1 conv, block-diagonal over the batch.
    wpwn = np.zeros((NR_OUT, NR_MID), np.float32)
    for n in range(N):
        wpwn[n * F2:(n + 1) * F2, n * F1D:(n + 1) * F1D] = wpw

    # AvgPool (1,8).
    pool2 = np.zeros((W2, P2), np.float32)
    for p in range(P2):
        pool2[8 * p:8 * p + 8, p] = 0.125

    # MXU operands stored in bf16 (MXU default precision rounds to bf16
    # anyway) -> halves constant DMA/VMEM.  w2e is a VPU operand -> keep f32.
    consts = [jnp.asarray(toe1, jnp.bfloat16),
              jnp.asarray(wdstack, jnp.bfloat16),
              jnp.asarray(pool1pad, jnp.bfloat16),
              jnp.asarray(w2e, jnp.float32),
              jnp.asarray(wpwn, jnp.bfloat16),
              jnp.asarray(pool2, jnp.bfloat16)]
    full = dict(w1=w1_full, wd=wd_full, w2=w2_full, wpw=wpw_full)
    return consts, full


# --------------------------------- wrapper ----------------------------------
def eegnet_forward(x, consts):
    """x: (N, C, T) float32 -> flattened features (N, F2 * P2)."""
    # No jnp.pad: conv1's zero padding lives in the Toeplitz matrix.  bf16
    # cast is numerically free (MXU rounds operands to bf16 regardless).
    xrows = x.reshape(NR_IN, T).astype(jnp.bfloat16)

    in_specs = [pl.BlockSpec((NR_IN, T), lambda i: (0, 0))]
    for a in consts:
        in_specs.append(pl.BlockSpec(a.shape, (lambda i, _nd=a.ndim: (0,) * _nd)))

    out = pl.pallas_call(
        eegnet_kernel,
        grid=(1,),   # single step: per-step overhead exceeds remaining DMA
        in_specs=in_specs,
        out_specs=pl.BlockSpec((NR_OUT, P2), lambda i: (0, 0)),
        out_shape=jax.ShapeDtypeStruct((NR_OUT, P2), jnp.float32),
        compiler_params=pltpu.CompilerParams(dimension_semantics=("arbitrary",)),
    )(xrows, *consts)
    # (N*F2, P2) -> (N, F2*P2): contiguous row-major reshape, matches torch's
    # x.reshape(x.size(0), -1).
    return out.reshape(N, F2 * P2)


# ------------------------------ pure-JAX reference --------------------------
def reference_forward(x, full):
    dn = ("NCHW", "OIHW", "NCHW")
    y = x[:, None, :, :]
    y = lax.conv_general_dilated(y, full["w1"], (1, 1), [(0, 0), (PAD1, PAD1)],
                                 dimension_numbers=dn)
    y = y * BN_SCALE
    y = lax.conv_general_dilated(y, full["wd"], (1, 1), [(0, 0), (0, 0)],
                                 dimension_numbers=dn, feature_group_count=F1)
    y = y * BN_SCALE
    y = jnp.where(y > 0, y, jnp.exp(y) - 1.0)
    p = y.shape[-1] // 4
    y = y[..., :p * 4].reshape(y.shape[0], y.shape[1], 1, p, 4).mean(-1)
    y = lax.conv_general_dilated(y, full["w2"], (1, 1), [(0, 0), (PAD2, PAD2)],
                                 dimension_numbers=dn, feature_group_count=F1D)
    y = lax.conv_general_dilated(y, full["wpw"], (1, 1), [(0, 0), (0, 0)],
                                 dimension_numbers=dn)
    y = y * BN_SCALE
    y = jnp.where(y > 0, y, jnp.exp(y) - 1.0)
    p = y.shape[-1] // 8
    y = y[..., :p * 8].reshape(y.shape[0], y.shape[1], 1, p, 8).mean(-1)
    return y.reshape(y.shape[0], -1)


# ----------------------------------- main ------------------------------------
if __name__ == "__main__":
    key = jax.random.PRNGKey(0)
    kp, kx = jax.random.split(key)
    consts, full = build_params(kp)

    x = jax.random.normal(kx, (N, C, T), jnp.float32)

    feats = jax.block_until_ready(eegnet_forward(x, consts))
    ref = jax.block_until_ready(reference_forward(x, full))

    # MXU default-precision (bf16 operand) matmuls vs XLA convs: modest tol.
    np.testing.assert_allclose(np.asarray(feats), np.asarray(ref),
                               rtol=2e-2, atol=5e-3)

    # TODO(synk): training-mode semantics (batch-statistic BatchNorm, stochastic
    # Dropout) and the .classify() Linear + LogSoftmax head are intentionally
    # not implemented; forward() in eval mode is what the kernel reproduces.
    print("KERNEL_OK")
</pallas_src>

<mosaic_0001>
module attributes {stable_mosaic.version = 11 : i64} {
  func.func @eegnet_kernel(%arg0: i32, %arg1: memref<8x128xbf16, #tpu.memory_space<vmem>>, %arg2: memref<128x1024xbf16, #tpu.memory_space<vmem>>, %arg3: memref<8x32x8xbf16, #tpu.memory_space<vmem>>, %arg4: memref<128x48xbf16, #tpu.memory_space<vmem>>, %arg5: memref<32x16xf32, #tpu.memory_space<vmem>>, %arg6: memref<32x32xbf16, #tpu.memory_space<vmem>>, %arg7: memref<32x4xbf16, #tpu.memory_space<vmem>>, %arg8: memref<32x4xf32, #tpu.memory_space<vmem>>) attributes {dimension_semantics = [#tpu.dimension_semantics<arbitrary>], iteration_bounds = array<i64: 1>, scalar_prefetch = 0 : i64, scratch_operands = 0 : i64, tpu.core_type = #tpu.core_type<tc>, window_params = [{pipeline_mode = #tpu.pipeline_mode<synchronous>, transform_indices = @transform_0, window_bounds = array<i64: 8, 128>}, {pipeline_mode = #tpu.pipeline_mode<synchronous>, transform_indices = @transform_1, window_bounds = array<i64: 128, 1024>}, {pipeline_mode = #tpu.pipeline_mode<synchronous>, transform_indices = @transform_2, window_bounds = array<i64: 8, 32, 8>}, {pipeline_mode = #tpu.pipeline_mode<synchronous>, transform_indices = @transform_3, window_bounds = array<i64: 128, 48>}, {pipeline_mode = #tpu.pipeline_mode<synchronous>, transform_indices = @transform_4, window_bounds = array<i64: 32, 16>}, {pipeline_mode = #tpu.pipeline_mode<synchronous>, transform_indices = @transform_5, window_bounds = array<i64: 32, 32>}, {pipeline_mode = #tpu.pipeline_mode<synchronous>, transform_indices = @transform_6, window_bounds = array<i64: 32, 4>}, {pipeline_mode = #tpu.pipeline_mode<synchronous>, transform_indices = @transform_7, window_bounds = array<i64: 32, 4>}]} {
    %c0 = arith.constant 0 : index
    %c0_0 = arith.constant 0 : index
    %0 = vector.load %arg1[%c0, %c0_0] : memref<8x128xbf16, #tpu.memory_space<vmem>>, vector<8x128xbf16>
    %c0_1 = arith.constant 0 : index
    %c0_2 = arith.constant 0 : index
    %1 = vector.load %arg2[%c0_1, %c0_2] : memref<128x1024xbf16, #tpu.memory_space<vmem>>, vector<128x1024xbf16>
    %cst = arith.constant dense<0.000000e+00> : vector<8x1024xf32>
    %2 = tpu.matmul %0, %1, %cst {dimension_numbers = #tpu.dot_dimension_numbers<[1], [0], [0], [1], [0, 0, 1, 1], [], []>} : vector<8x128xbf16>, vector<128x1024xbf16>, vector<8x1024xf32> -> vector<8x1024xf32>
    %cst_3 = arith.constant 0.000000e+00 : f32
    %3 = vector.broadcast %cst_3 : f32 to vector<32x128xf32>
    %c0_4 = arith.constant 0 : index
    %c0_5 = arith.constant 0 : index
    %c0_6 = arith.constant 0 : index
    %4 = vector.load %arg3[%c0_4, %c0_5, %c0_6] : memref<8x32x8xbf16, #tpu.memory_space<vmem>>, vector<1x32x8xbf16>
    %5 = vector.shape_cast %4 : vector<1x32x8xbf16> to vector<32x8xbf16>
    %6 = vector.extract_strided_slice %2 {offsets = [0, 0], sizes = [8, 128], strides = [1, 1]} : vector<8x1024xf32> to vector<8x128xf32>
    %cst_7 = arith.constant dense<0.000000e+00> : vector<32x128xf32>
    %7 = tpu.matmul %5, %6, %cst_7 {dimension_numbers = #tpu.dot_dimension_numbers<[1], [0], [0], [1], [0, 0, 1, 1], [], []>} : vector<32x8xbf16>, vector<8x128xf32>, vector<32x128xf32> -> vector<32x128xf32>
    %8 = arith.addf %3, %7 : vector<32x128xf32>
    %c1 = arith.constant 1 : index
    %c0_8 = arith.constant 0 : index
    %c0_9 = arith.constant 0 : index
    %9 = vector.load %arg3[%c1, %c0_8, %c0_9] : memref<8x32x8xbf16, #tpu.memory_space<vmem>>, vector<1x32x8xbf16>
    %10 = vector.shape_cast %9 : vector<1x32x8xbf16> to vector<32x8xbf16>
    %11 = vector.extract_strided_slice %2 {offsets = [0, 128], sizes = [8, 128], strides = [1, 1]} : vector<8x1024xf32> to vector<8x128xf32>
    %cst_10 = arith.constant dense<0.000000e+00> : vector<32x128xf32>
    %12 = tpu.matmul %10, %11, %cst_10 {dimension_numbers = #tpu.dot_dimension_numbers<[1], [0], [0], [1], [0, 0, 1, 1], [], []>} : vector<32x8xbf16>, vector<8x128xf32>, vector<32x128xf32> -> vector<32x128xf32>
    %13 = arith.addf %8, %12 : vector<32x128xf32>
    %c2 = arith.constant 2 : index
    %c0_11 = arith.constant 0 : index
    %c0_12 = arith.constant 0 : index
    %14 = vector.load %arg3[%c2, %c0_11, %c0_12] : memref<8x32x8xbf16, #tpu.memory_space<vmem>>, vector<1x32x8xbf16>
    %15 = vector.shape_cast %14 : vector<1x32x8xbf16> to vector<32x8xbf16>
    %16 = vector.extract_strided_slice %2 {offsets = [0, 256], sizes = [8, 128], strides = [1, 1]} : vector<8x1024xf32> to vector<8x128xf32>
    %cst_13 = arith.constant dense<0.000000e+00> : vector<32x128xf32>
    %17 = tpu.matmul %15, %16, %cst_13 {dimension_numbers = #tpu.dot_dimension_numbers<[1], [0], [0], [1], [0, 0, 1, 1], [], []>} : vector<32x8xbf16>, vector<8x128xf32>, vector<32x128xf32> -> vector<32x128xf32>
    %18 = arith.addf %13, %17 : vector<32x128xf32>
    %c3 = arith.constant 3 : index
    %c0_14 = arith.constant 0 : index
    %c0_15 = arith.constant 0 : index
    %19 = vector.load %arg3[%c3, %c0_14, %c0_15] : memref<8x32x8xbf16, #tpu.memory_space<vmem>>, vector<1x32x8xbf16>
    %20 = vector.shape_cast %19 : vector<1x32x8xbf16> to vector<32x8xbf16>
    %21 = vector.extract_strided_slice %2 {offsets = [0, 384], sizes = [8, 128], strides = [1, 1]} : vector<8x1024xf32> to vector<8x128xf32>
    %cst_16 = arith.constant dense<0.000000e+00> : vector<32x128xf32>
    %22 = tpu.matmul %20, %21, %cst_16 {dimension_numbers = #tpu.dot_dimension_numbers<[1], [0], [0], [1], [0, 0, 1, 1], [], []>} : vector<32x8xbf16>, vector<8x128xf32>, vector<32x128xf32> -> vector<32x128xf32>
    %23 = arith.addf %18, %22 : vector<32x128xf32>
    %c4 = arith.constant 4 : index
    %c0_17 = arith.constant 0 : index
    %c0_18 = arith.constant 0 : index
    %24 = vector.load %arg3[%c4, %c0_17, %c0_18] : memref<8x32x8xbf16, #tpu.memory_space<vmem>>, vector<1x32x8xbf16>
    %25 = vector.shape_cast %24 : vector<1x32x8xbf16> to vector<32x8xbf16>
    %26 = vector.extract_strided_slice %2 {offsets = [0, 512], sizes = [8, 128], strides = [1, 1]} : vector<8x1024xf32> to vector<8x128xf32>
    %cst_19 = arith.constant dense<0.000000e+00> : vector<32x128xf32>
    %27 = tpu.matmul %25, %26, %cst_19 {dimension_numbers = #tpu.dot_dimension_numbers<[1], [0], [0], [1], [0, 0, 1, 1], [], []>} : vector<32x8xbf16>, vector<8x128xf32>, vector<32x128xf32> -> vector<32x128xf32>
    %28 = arith.addf %23, %27 : vector<32x128xf32>
    %c5 = arith.constant 5 : index
    %c0_20 = arith.constant 0 : index
    %c0_21 = arith.constant 0 : index
    %29 = vector.load %arg3[%c5, %c0_20, %c0_21] : memref<8x32x8xbf16, #tpu.memory_space<vmem>>, vector<1x32x8xbf16>
    %30 = vector.shape_cast %29 : vector<1x32x8xbf16> to vector<32x8xbf16>
    %31 = vector.extract_strided_slice %2 {offsets = [0, 640], sizes = [8, 128], strides = [1, 1]} : vector<8x1024xf32> to vector<8x128xf32>
    %cst_22 = arith.constant dense<0.000000e+00> : vector<32x128xf32>
    %32 = tpu.matmul %30, %31, %cst_22 {dimension_numbers = #tpu.dot_dimension_numbers<[1], [0], [0], [1], [0, 0, 1, 1], [], []>} : vector<32x8xbf16>, vector<8x128xf32>, vector<32x128xf32> -> vector<32x128xf32>
    %33 = arith.addf %28, %32 : vector<32x128xf32>
    %c6 = arith.constant 6 : index
    %c0_23 = arith.constant 0 : index
    %c0_24 = arith.constant 0 : index
    %34 = vector.load %arg3[%c6, %c0_23, %c0_24] : memref<8x32x8xbf16, #tpu.memory_space<vmem>>, vector<1x32x8xbf16>
    %35 = vector.shape_cast %34 : vector<1x32x8xbf16> to vector<32x8xbf16>
    %36 = vector.extract_strided_slice %2 {offsets = [0, 768], sizes = [8, 128], strides = [1, 1]} : vector<8x1024xf32> to vector<8x128xf32>
    %cst_25 = arith.constant dense<0.000000e+00> : vector<32x128xf32>
    %37 = tpu.matmul %35, %36, %cst_25 {dimension_numbers = #tpu.dot_dimension_numbers<[1], [0], [0], [1], [0, 0, 1, 1], [], []>} : vector<32x8xbf16>, vector<8x128xf32>, vector<32x128xf32> -> vector<32x128xf32>
    %38 = arith.addf %33, %37 : vector<32x128xf32>
    %c7 = arith.constant 7 : index
    %c0_26 = arith.constant 0 : index
    %c0_27 = arith.constant 0 : index
    %39 = vector.load %arg3[%c7, %c0_26, %c0_27] : memref<8x32x8xbf16, #tpu.memory_space<vmem>>, vector<1x32x8xbf16>
    %40 = vector.shape_cast %39 : vector<1x32x8xbf16> to vector<32x8xbf16>
    %41 = vector.extract_strided_slice %2 {offsets = [0, 896], sizes = [8, 128], strides = [1, 1]} : vector<8x1024xf32> to vector<8x128xf32>
    %cst_28 = arith.constant dense<0.000000e+00> : vector<32x128xf32>
    %42 = tpu.matmul %40, %41, %cst_28 {dimension_numbers = #tpu.dot_dimension_numbers<[1], [0], [0], [1], [0, 0, 1, 1], [], []>} : vector<32x8xbf16>, vector<8x128xf32>, vector<32x128xf32> -> vector<32x128xf32>
    %43 = arith.addf %38, %42 : vector<32x128xf32>
    %cst_29 = arith.constant 9.990010e-01 : f32
    %44 = vector.broadcast %cst_29 : f32 to vector<32x128xf32>
    %45 = arith.mulf %43, %44 : vector<32x128xf32>
    %cst_30 = arith.constant 0.000000e+00 : f32
    %46 = vector.broadcast %cst_30 : f32 to vector<32x128xf32>
    %47 = arith.cmpf ogt, %45, %46 : vector<32x128xf32>
    %48 = math.exp %45 : vector<32x128xf32>
    %cst_31 = arith.constant 1.000000e+00 : f32
    %49 = vector.broadcast %cst_31 : f32 to vector<32x128xf32>
    %50 = arith.subf %48, %49 : vector<32x128xf32>
    %51 = arith.select %47, %45, %50 : vector<32x128xi1>, vector<32x128xf32>
    %c0_32 = arith.constant 0 : index
    %c0_33 = arith.constant 0 : index
    %52 = vector.load %arg4[%c0_32, %c0_33] : memref<128x48xbf16, #tpu.memory_space<vmem>>, vector<128x48xbf16>
    %cst_34 = arith.constant dense<0.000000e+00> : vector<32x48xf32>
    %53 = tpu.matmul %51, %52, %cst_34 {dimension_numbers = #tpu.dot_dimension_numbers<[1], [0], [0], [1], [0, 0, 1, 1], [], []>} : vector<32x128xf32>, vector<128x48xbf16>, vector<32x48xf32> -> vector<32x48xf32>
    %c0_35 = arith.constant 0 : index
    %c0_36 = arith.constant 0 : index
    %54 = vector.load %arg5[%c0_35, %c0_36] : memref<32x16xf32, #tpu.memory_space<vmem>>, vector<32x16xf32>
    %cst_37 = arith.constant 0.000000e+00 : f32
    %55 = vector.broadcast %cst_37 : f32 to vector<32x32xf32>
    %56 = vector.extract_strided_slice %54 {offsets = [0, 0], sizes = [32, 1], strides = [1, 1]} : vector<32x16xf32> to vector<32x1xf32>
    %57 = vector.extract_strided_slice %53 {offsets = [0, 0], sizes = [32, 32], strides = [1, 1]} : vector<32x48xf32> to vector<32x32xf32>
    %58 = vector.broadcast %56 : vector<32x1xf32> to vector<32x32xf32>
    %59 = arith.mulf %58, %57 : vector<32x32xf32>
    %60 = arith.addf %55, %59 : vector<32x32xf32>
    %61 = vector.extract_strided_slice %54 {offsets = [0, 1], sizes = [32, 1], strides = [1, 1]} : vector<32x16xf32> to vector<32x1xf32>
    %62 = vector.extract_strided_slice %53 {offsets = [0, 1], sizes = [32, 32], strides = [1, 1]} : vector<32x48xf32> to vector<32x32xf32>
    %63 = vector.broadcast %61 : vector<32x1xf32> to vector<32x32xf32>
    %64 = arith.mulf %63, %62 : vector<32x32xf32>
    %65 = arith.addf %60, %64 : vector<32x32xf32>
    %66 = vector.extract_strided_slice %54 {offsets = [0, 2], sizes = [32, 1], strides = [1, 1]} : vector<32x16xf32> to vector<32x1xf32>
    %67 = vector.extract_strided_slice %53 {offsets = [0, 2], sizes = [32, 32], strides = [1, 1]} : vector<32x48xf32> to vector<32x32xf32>
    %68 = vector.broadcast %66 : vector<32x1xf32> to vector<32x32xf32>
    %69 = arith.mulf %68, %67 : vector<32x32xf32>
    %70 = arith.addf %65, %69 : vector<32x32xf32>
    %71 = vector.extract_strided_slice %54 {offsets = [0, 3], sizes = [32, 1], strides = [1, 1]} : vector<32x16xf32> to vector<32x1xf32>
    %72 = vector.extract_strided_slice %53 {offsets = [0, 3], sizes = [32, 32], strides = [1, 1]} : vector<32x48xf32> to vector<32x32xf32>
    %73 = vector.broadcast %71 : vector<32x1xf32> to vector<32x32xf32>
    %74 = arith.mulf %73, %72 : vector<32x32xf32>
    %75 = arith.addf %70, %74 : vector<32x32xf32>
    %76 = vector.extract_strided_slice %54 {offsets = [0, 4], sizes = [32, 1], strides = [1, 1]} : vector<32x16xf32> to vector<32x1xf32>
    %77 = vector.extract_strided_slice %53 {offsets = [0, 4], sizes = [32, 32], strides = [1, 1]} : vector<32x48xf32> to vector<32x32xf32>
    %78 = vector.broadcast %76 : vector<32x1xf32> to vector<32x32xf32>
    %79 = arith.mulf %78, %77 : vector<32x32xf32>
    %80 = arith.addf %75, %79 : vector<32x32xf32>
    %81 = vector.extract_strided_slice %54 {offsets = [0, 5], sizes = [32, 1], strides = [1, 1]} : vector<32x16xf32> to vector<32x1xf32>
    %82 = vector.extract_strided_slice %53 {offsets = [0, 5], sizes = [32, 32], strides = [1, 1]} : vector<32x48xf32> to vector<32x32xf32>
    %83 = vector.broadcast %81 : vector<32x1xf32> to vector<32x32xf32>
    %84 = arith.mulf %83, %82 : vector<32x32xf32>
    %85 = arith.addf %80, %84 : vector<32x32xf32>
    %86 = vector.extract_strided_slice %54 {offsets = [0, 6], sizes = [32, 1], strides = [1, 1]} : vector<32x16xf32> to vector<32x1xf32>
    %87 = vector.extract_strided_slice %53 {offsets = [0, 6], sizes = [32, 32], strides = [1, 1]} : vector<32x48xf32> to vector<32x32xf32>
    %88 = vector.broadcast %86 : vector<32x1xf32> to vector<32x32xf32>
    %89 = arith.mulf %88, %87 : vector<32x32xf32>
    %90 = arith.addf %85, %89 : vector<32x32xf32>
    %91 = vector.extract_strided_slice %54 {offsets = [0, 7], sizes = [32, 1], strides = [1, 1]} : vector<32x16xf32> to vector<32x1xf32>
    %92 = vector.extract_strided_slice %53 {offsets = [0, 7], sizes = [32, 32], strides = [1, 1]} : vector<32x48xf32> to vector<32x32xf32>
    %93 = vector.broadcast %91 : vector<32x1xf32> to vector<32x32xf32>
    %94 = arith.mulf %93, %92 : vector<32x32xf32>
    %95 = arith.addf %90, %94 : vector<32x32xf32>
    %96 = vector.extract_strided_slice %54 {offsets = [0, 8], sizes = [32, 1], strides = [1, 1]} : vector<32x16xf32> to vector<32x1xf32>
    %97 = vector.extract_strided_slice %53 {offsets = [0, 8], sizes = [32, 32], strides = [1, 1]} : vector<32x48xf32> to vector<32x32xf32>
    %98 = vector.broadcast %96 : vector<32x1xf32> to vector<32x32xf32>
    %99 = arith.mulf %98, %97 : vector<32x32xf32>
    %100 = arith.addf %95, %99 : vector<32x32xf32>
    %101 = vector.extract_strided_slice %54 {offsets = [0, 9], sizes = [32, 1], strides = [1, 1]} : vector<32x16xf32> to vector<32x1xf32>
    %102 = vector.extract_strided_slice %53 {offsets = [0, 9], sizes = [32, 32], strides = [1, 1]} : vector<32x48xf32> to vector<32x32xf32>
    %103 = vector.broadcast %101 : vector<32x1xf32> to vector<32x32xf32>
    %104 = arith.mulf %103, %102 : vector<32x32xf32>
    %105 = arith.addf %100, %104 : vector<32x32xf32>
    %106 = vector.extract_strided_slice %54 {offsets = [0, 10], sizes = [32, 1], strides = [1, 1]} : vector<32x16xf32> to vector<32x1xf32>
    %107 = vector.extract_strided_slice %53 {offsets = [0, 10], sizes = [32, 32], strides = [1, 1]} : vector<32x48xf32> to vector<32x32xf32>
    %108 = vector.broadcast %106 : vector<32x1xf32> to vector<32x32xf32>
    %109 = arith.mulf %108, %107 : vector<32x32xf32>
    %110 = arith.addf %105, %109 : vector<32x32xf32>
    %111 = vector.extract_strided_slice %54 {offsets = [0, 11], sizes = [32, 1], strides = [1, 1]} : vector<32x16xf32> to vector<32x1xf32>
    %112 = vector.extract_strided_slice %53 {offsets = [0, 11], sizes = [32, 32], strides = [1, 1]} : vector<32x48xf32> to vector<32x32xf32>
    %113 = vector.broadcast %111 : vector<32x1xf32> to vector<32x32xf32>
    %114 = arith.mulf %113, %112 : vector<32x32xf32>
    %115 = arith.addf %110, %114 : vector<32x32xf32>
    %116 = vector.extract_strided_slice %54 {offsets = [0, 12], sizes = [32, 1], strides = [1, 1]} : vector<32x16xf32> to vector<32x1xf32>
    %117 = vector.extract_strided_slice %53 {offsets = [0, 12], sizes = [32, 32], strides = [1, 1]} : vector<32x48xf32> to vector<32x32xf32>
    %118 = vector.broadcast %116 : vector<32x1xf32> to vector<32x32xf32>
    %119 = arith.mulf %118, %117 : vector<32x32xf32>
    %120 = arith.addf %115, %119 : vector<32x32xf32>
    %121 = vector.extract_strided_slice %54 {offsets = [0, 13], sizes = [32, 1], strides = [1, 1]} : vector<32x16xf32> to vector<32x1xf32>
    %122 = vector.extract_strided_slice %53 {offsets = [0, 13], sizes = [32, 32], strides = [1, 1]} : vector<32x48xf32> to vector<32x32xf32>
    %123 = vector.broadcast %121 : vector<32x1xf32> to vector<32x32xf32>
    %124 = arith.mulf %123, %122 : vector<32x32xf32>
    %125 = arith.addf %120, %124 : vector<32x32xf32>
    %126 = vector.extract_strided_slice %54 {offsets = [0, 14], sizes = [32, 1], strides = [1, 1]} : vector<32x16xf32> to vector<32x1xf32>
    %127 = vector.extract_strided_slice %53 {offsets = [0, 14], sizes = [32, 32], strides = [1, 1]} : vector<32x48xf32> to vector<32x32xf32>
    %128 = vector.broadcast %126 : vector<32x1xf32> to vector<32x32xf32>
    %129 = arith.mulf %128, %127 : vector<32x32xf32>
    %130 = arith.addf %125, %129 : vector<32x32xf32>
    %131 = vector.extract_strided_slice %54 {offsets = [0, 15], sizes = [32, 1], strides = [1, 1]} : vector<32x16xf32> to vector<32x1xf32>
    %132 = vector.extract_strided_slice %53 {offsets = [0, 15], sizes = [32, 32], strides = [1, 1]} : vector<32x48xf32> to vector<32x32xf32>
    %133 = vector.broadcast %131 : vector<32x1xf32> to vector<32x32xf32>
    %134 = arith.mulf %133, %132 : vector<32x32xf32>
    %135 = arith.addf %130, %134 : vector<32x32xf32>
    %c0_38 = arith.constant 0 : index
    %c0_39 = arith.constant 0 : index
    %136 = vector.load %arg6[%c0_38, %c0_39] : memref<32x32xbf16, #tpu.memory_space<vmem>>, vector<32x32xbf16>
    %cst_40 = arith.constant dense<0.000000e+00> : vector<32x32xf32>
    %137 = tpu.matmul %136, %135, %cst_40 {dimension_numbers = #tpu.dot_dimension_numbers<[1], [0], [0], [1], [0, 0, 1, 1], [], []>} : vector<32x32xbf16>, vector<32x32xf32>, vector<32x32xf32> -> vector<32x32xf32>
    %cst_41 = arith.constant 0.999500393 : f32
    %138 = vector.broadcast %cst_41 : f32 to vector<32x32xf32>
    %139 = arith.mulf %137, %138 : vector<32x32xf32>
    %cst_42 = arith.constant 0.000000e+00 : f32
    %140 = vector.broadcast %cst_42 : f32 to vector<32x32xf32>
    %141 = arith.cmpf ogt, %139, %140 : vector<32x32xf32>
    %142 = math.exp %139 : vector<32x32xf32>
    %cst_43 = arith.constant 1.000000e+00 : f32
    %143 = vector.broadcast %cst_43 : f32 to vector<32x32xf32>
    %144 = arith.subf %142, %143 : vector<32x32xf32>
    %145 = arith.select %141, %139, %144 : vector<32x32xi1>, vector<32x32xf32>
    %c0_44 = arith.constant 0 : index
    %c0_45 = arith.constant 0 : index
    %146 = vector.load %arg7[%c0_44, %c0_45] : memref<32x4xbf16, #tpu.memory_space<vmem>>, vector<32x4xbf16>
    %cst_46 = arith.constant dense<0.000000e+00> : vector<32x4xf32>
    %147 = tpu.matmul %145, %146, %cst_46 {dimension_numbers = #tpu.dot_dimension_numbers<[1], [0], [0], [1], [0, 0, 1, 1], [], []>} : vector<32x32xf32>, vector<32x4xbf16>, vector<32x4xf32> -> vector<32x4xf32>
    %c0_47 = arith.constant 0 : index
    %c0_48 = arith.constant 0 : index
    %148 = vector.load %arg8[%c0_47, %c0_48] : memref<32x4xf32, #tpu.memory_space<vmem>>, vector<32x4xf32>
    tpu.vector_store %arg8[%c0_47, %c0_48], %147 {strides = array<i32>} : memref<32x4xf32, #tpu.memory_space<vmem>>, vector<32x4xf32>,
    return
  }
  func.func @transform_0(%arg0: i32) -> (i32, i32) {
    %c0_i32 = arith.constant 0 : i32
    %c0_i32_0 = arith.constant 0 : i32
    %c0_i32_1 = arith.constant 0 : i32
    return %c0_i32, %c0_i32_0 : i32, i32
  }
  func.func @transform_1(%arg0: i32) -> (i32, i32) {
    %c0_i32 = arith.constant 0 : i32
    %c0_i32_0 = arith.constant 0 : i32
    %c0_i32_1 = arith.constant 0 : i32
    return %c0_i32, %c0_i32_0 : i32, i32
  }
  func.func @transform_2(%arg0: i32) -> (i32, i32, i32) {
    %c0_i32 = arith.constant 0 : i32
    %c0_i32_0 = arith.constant 0 : i32
    %c0_i32_1 = arith.constant 0 : i32
    %c0_i32_2 = arith.constant 0 : i32
    return %c0_i32, %c0_i32_0, %c0_i32_1 : i32, i32, i32
  }
  func.func @transform_3(%arg0: i32) -> (i32, i32) {
    %c0_i32 = arith.constant 0 : i32
    %c0_i32_0 = arith.constant 0 : i32
    %c0_i32_1 = arith.constant 0 : i32
    return %c0_i32, %c0_i32_0 : i32, i32
  }
  func.func @transform_4(%arg0: i32) -> (i32, i32) {
    %c0_i32 = arith.constant 0 : i32
    %c0_i32_0 = arith.constant 0 : i32
    %c0_i32_1 = arith.constant 0 : i32
    return %c0_i32, %c0_i32_0 : i32, i32
  }
  func.func @transform_5(%arg0: i32) -> (i32, i32) {
    %c0_i32 = arith.constant 0 : i32
    %c0_i32_0 = arith.constant 0 : i32
    %c0_i32_1 = arith.constant 0 : i32
    return %c0_i32, %c0_i32_0 : i32, i32
  }
  func.func @transform_6(%arg0: i32) -> (i32, i32) {
    %c0_i32 = arith.constant 0 : i32
    %c0_i32_0 = arith.constant 0 : i32
    %c0_i32_1 = arith.constant 0 : i32
    return %c0_i32, %c0_i32_0 : i32, i32
  }
  func.func @transform_7(%arg0: i32) -> (i32, i32) {
    %c0_i32 = arith.constant 0 : i32
    %c0_i32_0 = arith.constant 0 : i32
    %c0_i32_1 = arith.constant 0 : i32
    return %c0_i32, %c0_i32_0 : i32, i32
  }
}

</mosaic_0001>

<bundles_post_ra>
// kernel: tpu_custom_call.1
= control target key start
LH: loop header
LB: loop body
LE: loop exit
PB: predicated region body
PF: predicated region fallthrough
CT: control target
= control target key end

     0   :  { %12 = vsyncpa [#allocation3], 0  ;;  %s2891_s24 = smov [#allocation2]   ;;  %s3452_s0 = inlined_call_operand.vmem [shape: bf16[8,128], index: 0, kind: input, shape index: {}]   ;;  %s3453_s1 = inlined_call_operand.hbm [shape: bf16[128,1024], index: 1, kind: input, shape index: {}]   ;;  %s3454_s2 = inlined_call_operand.vmem [shape: bf16[8,32,8], index: 2, kind: input, shape index: {}]   ;;  %s3455_s3 = inlined_call_operand.vmem [shape: bf16[128,48], index: 3, kind: input, shape index: {}]   ;;  %s3456_s4 = inlined_call_operand.vmem [shape: f32[32,16], index: 4, kind: input, shape index: {}]   ;;  %s3457_s5 = inlined_call_operand.vmem [shape: bf16[32,32], index: 5, kind: input, shape index: {}]   ;;  %s3458_s6 = inlined_call_operand.vmem [shape: bf16[32,4], index: 6, kind: input, shape index: {}]   ;;  %s3459_s7 = inlined_call_operand.vmem [shape: f32[32,4], index: 7, kind: output, shape index: {}]  }
   0x1   :  { %s20_s25 = sshll.u32 %s2891_s24, 4  ;;  %s2867_s28 = scalar_lea.hbm %s3453_s1, 8192  ;;  %s21_s25 = int_to_ptr.vmem [resolvable:$true] %s20_s25 }
   0x2   :  { %p2868_p0 = scmp.ne.s32.totalorder %s3453_s1, %s2867_s28  ;;  %p2871_p1 = scmp.lt.u32.totalorder %s2867_s28, %s3453_s1 }
   0x4   :  { %p2873_p2 = pnand %p2871_p1, %p2868_p0 }
   0x6   :  { %2876 = shalt.err (!%p2873_p2)
}
   0x7   :  { %s2877_s10 = scalar_lea.vmem %s21_s25, 8192  ;;  %p2882_p4 = scmp.lt.s32.totalorder %s21_s25, %s21_s25 }
   0x8   :  { %p2878_p3 = scmp.ne.s32.totalorder %s21_s25, %s2877_s10  ;;  %p2883_p5 = scmp.lt.s32.totalorder %s2877_s10, %s2877_s10 }
   0xa   :  { %p2884_p6 = por %p2883_p5, %p2882_p4 }
   0xc   :  { %p2885_p7 = pnand %p2884_p6, %p2878_p3 }
   0xe   :  { %2888 = shalt.err (!%p2885_p7)
}
   0xf   :  { %s2892_s11 = smov 512   ;;  %s2893_s12 = smov 32  }
  0x10   :  { %26 = dma.hbm_to_vmem [thread:$0]  %s3453_s1, 8192, %s21_s25, [#allocation3], %s2892_s11, %s2892_s11, %s2893_s12  }
  0x11   :  { %2889 = dma.done.wait [#allocation3], 8192  }
  0x12   :  { %2890 = vsyncadd [#allocation3], 4294959104  ;;  %v2894_v0 = vmov 0   ;;  %v42_v1 = vld [vmem:[#allocation2] sm:$0xff]  ;;  %v43_v7 = vld [vmem:[#allocation2 + $0x8] sm:$0xff]  ;;  %vm609_vm0 = vcmask 64512  }
  0x13   :  { %458 = vmatprep.mubr.bf16.mxu0 %v2894_v0  ;;  %499 = vmatprep.mubr.bf16.mxu1 %v2894_v0  ;;  %v46_v2 = vld [vmem:[#allocation2 + $0x20] sm:$0xff]  ;;  %v47_v8 = vld [vmem:[#allocation2 + $0x28] sm:$0xff]  ;;  %v44_v60 = vld [vmem:[#allocation2 + $0x10] sm:$0xff]  ;;  %s2911_s18 = smov 126   ;;  %s2912_s19 = smov 125   ;;  %vm2217_vm5 = vcmask 261120  }
  0x14   :  { %v50_v3 = vld [vmem:[#allocation2 + $0x40] sm:$0xff]  ;;  %v2421_v4 = vcombine.high %v42_v1, %v46_v2  ;;  %v2420_v5 = vcombine.low %v42_v1, %v46_v2  ;;  %v2423_v10 = vcombine.high %v43_v7, %v47_v8  ;;  %v2422_v11 = vcombine.low %v43_v7, %v47_v8  ;;  %v51_v14 = vld [vmem:[#allocation2 + $0x48] sm:$0xff]  ;;  %v48_v61 = vld [vmem:[#allocation2 + $0x30] sm:$0xff]  ;;  %s2913_s20 = smov 124   ;;  %s2914_s21 = smov 123  }
  0x15   :  { %v54_v6 = vld [vmem:[#allocation2 + $0x60] sm:$0xff]  ;;  %v55_v15 = vld [vmem:[#allocation2 + $0x68] sm:$0xff]  ;;  %v45_v1 = vld [vmem:[#allocation2 + $0x18] sm:$0xff]  ;;  %v2425_v7 = vcombine.high %v44_v60, %v48_v61  ;;  %s2915_s22 = smov 122   ;;  %s2916_s23 = smov 121   ;;  %vm2410_vm10 = vcmask 31744  }
  0x16   :  { %v2429_v9 = vcombine.high %v50_v3, %v54_v6  ;;  %v58_v12 = vld [vmem:[#allocation2 + $0x80] sm:$0xff]  ;;  %426 = vmatprep.subr.bf16.mxu0 %v2421_v4  ;;  %v2428_v16 = vcombine.low %v50_v3, %v54_v6  ;;  %467 = vmatprep.subr.bf16.mxu1 %v2423_v10  ;;  %v2431_v17 = vcombine.high %v51_v14, %v55_v15  ;;  %v59_v18 = vld [vmem:[#allocation2 + $0x88] sm:$0xff]  ;;  %v49_v2 = vld [vmem:[#allocation2 + $0x38] sm:$0xff]  ;;  %s2917_s24 = smov 120   ;;  %s2918_s25 = smov 119  }
  0x17   :  { %v62_v13 = vld [vmem:[#allocation2 + $0xa0] sm:$0xff]  ;;  %427 = vmatpush1.bf16.msra.mxu0 %v2420_v5  ;;  %v63_v19 = vld [vmem:[#allocation2 + $0xa8] sm:$0xff]  ;;  %468 = vmatpush1.bf16.msra.mxu1 %v2422_v11  ;;  %v2430_v21 = vcombine.low %v51_v14, %v55_v15  ;;  %v52_v5 = vld [vmem:[#allocation2 + $0x50] sm:$0xff]  ;;  %s2919_s26 = smov 118   ;;  %s2921_s27 = smov 116  }
  0x18   :  { %428 = vmatprep.subr.bf16.mxu0 %v2429_v9  ;;  %v2437_v20 = vcombine.high %v58_v12, %v62_v13  ;;  %469 = vmatprep.subr.bf16.mxu1 %v2431_v17  ;;  %v66_v22 = vld [vmem:[#allocation2 + $0xc0] sm:$0xff]  ;;  %v2439_v24 = vcombine.high %v59_v18, %v63_v19  ;;  %v67_v25 = vld [vmem:[#allocation2 + $0xc8] sm:$0xff]  ;;  %v2436_v27 = vcombine.low %v58_v12, %v62_v13  ;;  %v56_v6 = vld [vmem:[#allocation2 + $0x70] sm:$0xff]  ;;  %s2922_s28 = smov 115   ;;  %s2923_s29 = smov 114  }
  0x19   :  { %v70_v23 = vld [vmem:[#allocation2 + $0xe0] sm:$0xff]  ;;  %v71_v26 = vld [vmem:[#allocation2 + $0xe8] sm:$0xff]  ;;  %v2438_v29 = vcombine.low %v59_v18, %v63_v19  ;;  %v53_v9 = vld [vmem:[#allocation2 + $0x58] sm:$0xff]  ;;  %v2427_v12 = vcombine.high %v45_v1, %v49_v2  ;;  %v2424_v13 = vcombine.low %v44_v60, %v48_v61  ;;  %v2426_v17 = vcombine.low %v45_v1, %v49_v2  ;;  %s2924_s30 = smov 113  }
  0x1a   :  { %v2445_v28 = vcombine.high %v66_v22, %v70_v23  ;;  %v74_v30 = vld [vmem:[#allocation2 + $0x100] sm:$0xff]  ;;  %v2447_v32 = vcombine.high %v67_v25, %v71_v26  ;;  %v75_v33 = vld [vmem:[#allocation2 + $0x108] sm:$0xff]  ;;  %v2444_v35 = vcombine.low %v66_v22, %v70_v23  ;;  %v2446_v37 = vcombine.low %v67_v25, %v71_v26  ;;  %v57_v10 = vld [vmem:[#allocation2 + $0x78] sm:$0xff] }
  0x1b   :  { %429 = vmatpush1.bf16.msra.mxu0 %v2428_v16  ;;  %470 = vmatpush1.bf16.msra.mxu1 %v2430_v21  ;;  %v78_v31 = vld [vmem:[#allocation2 + $0x120] sm:$0xff]  ;;  %v79_v34 = vld [vmem:[#allocation2 + $0x128] sm:$0xff]  ;;  %v60_v14 = vld [vmem:[#allocation2 + $0x90] sm:$0xff]  ;;  %v2433_v16 = vcombine.high %v52_v5, %v56_v6  ;;  %v2432_v21 = vcombine.low %v52_v5, %v56_v6  ;;  %v2434_v25 = vcombine.low %v53_v9, %v57_v10 }
  0x1c   :  { %430 = vmatprep.subr.bf16.mxu0 %v2437_v20  ;;  %471 = vmatprep.subr.bf16.mxu1 %v2439_v24  ;;  %v2453_v36 = vcombine.high %v74_v30, %v78_v31  ;;  %v82_v38 = vld [vmem:[#allocation2 + $0x140] sm:$0xff]  ;;  %v2455_v40 = vcombine.high %v75_v33, %v79_v34  ;;  %v83_v41 = vld [vmem:[#allocation2 + $0x148] sm:$0xff]  ;;  %v2452_v43 = vcombine.low %v74_v30, %v78_v31  ;;  %v64_v15 = vld [vmem:[#allocation2 + $0xb0] sm:$0xff] }
  0x1d   :  { %v86_v39 = vld [vmem:[#allocation2 + $0x160] sm:$0xff]  ;;  %v87_v42 = vld [vmem:[#allocation2 + $0x168] sm:$0xff]  ;;  %v2454_v45 = vcombine.low %v75_v33, %v79_v34  ;;  %v61_v18 = vld [vmem:[#allocation2 + $0x98] sm:$0xff]  ;;  %v2435_v20 = vcombine.high %v53_v9, %v57_v10  ;;  %v2441_v24 = vcombine.high %v60_v14, %v64_v15 }
  0x1e   :  { %v2461_v44 = vcombine.high %v82_v38, %v86_v39  ;;  %v90_v46 = vld [vmem:[#allocation2 + $0x180] sm:$0xff]  ;;  %v2463_v48 = vcombine.high %v83_v41, %v87_v42  ;;  %v91_v49 = vld [vmem:[#allocation2 + $0x188] sm:$0xff]  ;;  %v2460_v51 = vcombine.low %v82_v38, %v86_v39  ;;  %v2462_v55 = vcombine.low %v83_v41, %v87_v42  ;;  %v65_v19 = vld [vmem:[#allocation2 + $0xb8] sm:$0xff] }
  0x1f   :  { %431 = vmatpush1.bf16.msra.mxu0 %v2436_v27  ;;  %472 = vmatpush1.bf16.msra.mxu1 %v2438_v29  ;;  %v94_v47 = vld [vmem:[#allocation2 + $0x1a0] sm:$0xff]  ;;  %v95_v50 = vld [vmem:[#allocation2 + $0x1a8] sm:$0xff]  ;;  %v68_v22 = vld [vmem:[#allocation2 + $0xd0] sm:$0xff]  ;;  %v2440_v29 = vcombine.low %v60_v14, %v64_v15  ;;  %v2442_v31 = vcombine.low %v61_v18, %v65_v19  ;;  %v2899_v14 = vmov 5   ;;  %v2900_v15 = vmov 6  }
  0x20   :  { %432 = vmatprep.subr.bf16.mxu0 %v2445_v28  ;;  %473 = vmatprep.subr.bf16.mxu1 %v2447_v32  ;;  %v98_v52 = vld [vmem:[#allocation2 + $0x1c0] sm:$0xff]  ;;  %v2469_v54 = vcombine.high %v90_v46, %v94_v47  ;;  %v99_v56 = vld [vmem:[#allocation2 + $0x1c8] sm:$0xff]  ;;  %v2471_v58 = vcombine.high %v91_v49, %v95_v50  ;;  %v2468_v59 = vcombine.low %v90_v46, %v94_v47  ;;  %v72_v23 = vld [vmem:[#allocation2 + $0xf0] sm:$0xff] }
  0x21   :  { %v102_v53 = vld [vmem:[#allocation2 + $0x1e0] sm:$0xff]  ;;  %v103_v57 = vld [vmem:[#allocation2 + $0x1e8] sm:$0xff]  ;;  %v2470_v63 = vcombine.low %v91_v49, %v95_v50  ;;  %v69_v26 = vld [vmem:[#allocation2 + $0xd8] sm:$0xff]  ;;  %v2443_v28 = vcombine.high %v61_v18, %v65_v19  ;;  %v2449_v30 = vcombine.high %v68_v22, %v72_v23 }
  0x22   :  { %v2477_v62 = vcombine.high %v98_v52, %v102_v53  ;;  %v2479_v3 = vcombine.high %v99_v56, %v103_v57  ;;  %v2476_v4 = vcombine.low %v98_v52, %v102_v53  ;;  %v2478_v8 = vcombine.low %v99_v56, %v103_v57  ;;  %v2982_v11 = vld [vmem:[%s3452_s0] sm:$0xf]  ;;  %v73_v27 = vld [vmem:[#allocation2 + $0xf8] sm:$0xff]  ;;  %v76_v32 = vld [vmem:[#allocation2 + $0x110] sm:$0xff] }
  0x23   :  { %433 = vmatpush1.bf16.msra.mxu0 %v2444_v35  ;;  %474 = vmatpush1.bf16.msra.mxu1 %v2446_v37  ;;  %v80_v33 = vld [vmem:[#allocation2 + $0x130] sm:$0xff]  ;;  %v2451_v34 = vcombine.high %v69_v26, %v73_v27  ;;  %v77_v35 = vld [vmem:[#allocation2 + $0x118] sm:$0xff]  ;;  %v2448_v37 = vcombine.low %v68_v22, %v72_v23  ;;  %v2450_v39 = vcombine.low %v69_v26, %v73_v27  ;;  %v3001_v6 = vld [vmem:[%s3456_s4] sm:$0xff] }
  0x24   :  { %434 = vmatprep.subr.bf16.mxu0 %v2453_v36  ;;  %475 = vmatprep.subr.bf16.mxu1 %v2455_v40  ;;  %v81_v36 = vld [vmem:[#allocation2 + $0x138] sm:$0xff]  ;;  %v2457_v38 = vcombine.high %v76_v32, %v80_v33  ;;  %v84_v40 = vld [vmem:[#allocation2 + $0x150] sm:$0xff]  ;;  %v3008_v9 = vld [vmem:[%s3456_s4 + $0x8] sm:$0xff] }
  0x25   :  { %v88_v41 = vld [vmem:[#allocation2 + $0x170] sm:$0xff]  ;;  %v2459_v42 = vcombine.high %v77_v35, %v81_v36  ;;  %v2458_v47 = vcombine.low %v77_v35, %v81_v36  ;;  %v97_v52 = vld [vmem:[#allocation2 + $0x1b8] sm:$0xff]  ;;  %v2825_v19 = vld [vmem:[%s3454_s2 + $0x20] sm:$0xff]  }
  0x26   :  { %v2465_v46 = vcombine.high %v84_v40, %v88_v41  ;;  %v96_v49 = vld [vmem:[#allocation2 + $0x1b0] sm:$0xff]  ;;  %v2464_v53 = vcombine.low %v84_v40, %v88_v41  ;;  %v105_v60 = vld [vmem:[#allocation2 + $0x1f8] sm:$0xff]  ;;  %v2839_v27 = vld [vmem:[%s3455_s3] sm:$0xff]  }
  0x27   :  { %435 = vmatpush1.bf16.msra.mxu0 %v2452_v43  ;;  %476 = vmatpush1.bf16.msra.mxu1 %v2454_v45  ;;  %v85_v43 = vld [vmem:[#allocation2 + $0x158] sm:$0xff]  ;;  %v2456_v45 = vcombine.low %v76_v32, %v80_v33  ;;  %v100_v56 = vld [vmem:[#allocation2 + $0x1d0] sm:$0xff]  ;;  %v2830_v41 = vld [vmem:[%s3454_s2 + $0x48] sm:$0xff]  }
  0x28   :  { %436 = vmatprep.subr.bf16.mxu0 %v2461_v44  ;;  %477 = vmatprep.subr.bf16.mxu1 %v2463_v48  ;;  %v89_v44 = vld [vmem:[#allocation2 + $0x178] sm:$0xff]  ;;  %v92_v48 = vld [vmem:[#allocation2 + $0x190] sm:$0xff] }
  0x29   :  { %v2467_v50 = vcombine.high %v85_v43, %v89_v44  ;;  %v104_v57 = vld [vmem:[#allocation2 + $0x1f0] sm:$0xff]  ;;  %v2472_v61 = vcombine.low %v92_v48, %v96_v49  ;;  %v3015_v10 = vld [vmem:[%s3456_s4 + $0x18] sm:$0xff] }
  0x2a   :  { %v2480_v2 = vcombine.low %v100_v56, %v104_v57  ;;  %v2835_v5 = vld [vmem:[%s3454_s2 + $0x10] sm:$0xff]   ;;  %v2837_v22 = vld [vmem:[%s3454_s2 + $0x18] sm:$0xff]  }
  0x2b   :  { %437 = vmatpush1.bf16.msra.mxu0 %v2460_v51  ;;  %478 = vmatpush1.bf16.msra.mxu1 %v2462_v55  ;;  %v93_v51 = vld [vmem:[#allocation2 + $0x198] sm:$0xff]  ;;  %v2466_v55 = vcombine.low %v85_v43, %v89_v44  ;;  %v2827_v32 = vld [vmem:[%s3454_s2 + $0x30] sm:$0xff]  }
  0x2c   :  { %438 = vmatprep.subr.bf16.mxu0 %v2469_v54  ;;  %479 = vmatprep.subr.bf16.mxu1 %v2471_v58  ;;  %v2473_v54 = vcombine.high %v92_v48, %v96_v49  ;;  %v2475_v58 = vcombine.high %v93_v51, %v97_v52  ;;  %v2828_v33 = vld [vmem:[%s3454_s2 + $0x38] sm:$0xff]   ;;  %v2831_v43 = vld [vmem:[%s3454_s2 + $0x50] sm:$0xff]  }
  0x2d   :  { %v2836_v48 = vld [vmem:[%s3454_s2 + $0x70] sm:$0xff]   ;;  %v2838_v49 = vld [vmem:[%s3454_s2 + $0x78] sm:$0xff]  }
  0x2f   :  { %439 = vmatpush1.bf16.msra.mxu0 %v2468_v59  ;;  %480 = vmatpush1.bf16.msra.mxu1 %v2470_v63  ;;  %v101_v59 = vld [vmem:[#allocation2 + $0x1d8] sm:$0xff]  ;;  %v2474_v63 = vcombine.low %v93_v51, %v97_v52  ;;  %v2843_v52 = vld [vmem:[%s3455_s3 + $0x20] sm:$0xff]  }
  0x30   :  { %440 = vmatprep.subr.bf16.mxu0 %v2477_v62  ;;  %481 = vmatprep.subr.bf16.mxu1 %v2479_v3  ;;  %v2481_v62 = vcombine.high %v100_v56, %v104_v57  ;;  %v2483_v1 = vcombine.high %v101_v59, %v105_v60  ;;  %v2482_v3 = vcombine.low %v101_v59, %v105_v60  ;;  %v2842_v51 = vld [vmem:[%s3455_s3 + $0x18] sm:$0xff]   ;;  %v2904_v57 = vmov 10  }
  0x31   :  { %v2846_v56 = vld [vmem:[%s3455_s3 + $0x38] sm:$0xff]   ;;  %v2906_v59 = vmov 12   ;;  %v2907_v60 = vmov 15  }
  0x33   :  { %441 = vmatpush1.bf16.msra.mxu0 %v2476_v4  ;;  %482 = vmatpush1.bf16.msra.mxu1 %v2478_v8  ;;  %v2823_v4 = vld [vmem:[%s3454_s2] sm:$0xff]   ;;  %v2896_v8 = vmov 1  }
  0x34   :  { %508 = vmatprep.subr.bf16.mxu0 %v2425_v7  ;;  %549 = vmatprep.subr.bf16.mxu1 %v2427_v12  ;;  %v2895_v7 = vmov 2   ;;  %v2897_v12 = vmov 3  }
  0x35   :  { %2781 = vset.pattern.permute.xlu1 %v2895_v7  ;;  %2780 = vset.pattern.permute.xlu0 %v2896_v8 }
  0x36   :  { %459 = vmatmul.mubr.bf16.vlgmr.msra.gmra.mrb[0].mxu0 %v2982_v11  ;;  %500 = vmatmul.mubr.bf16.vlgmr.msra.gmra.mrb[0].mxu1 %v2982_v11 }
  0x37   :  { %509 = vmatpush1.bf16.msra.mxu0 %v2424_v13  ;;  %550 = vmatpush1.bf16.msra.mxu1 %v2426_v17  ;;  %v2898_v13 = vmov 4   ;;  %v2824_v17 = vld [vmem:[%s3454_s2 + $0x8] sm:$0xff]  }
  0x38   :  { %510 = vmatprep.subr.bf16.mxu0 %v2433_v16  ;;  %551 = vmatprep.subr.bf16.mxu1 %v2435_v20  ;;  %v2901_v16 = vmov 8  }
  0x39   :  { %540 = vmatprep.mubr.bf16.mxu0 %v2894_v0  ;;  %581 = vmatprep.mubr.bf16.mxu1 %v2894_v0 }
  0x3a   :  { %1644 = vperm.xlu1 %2781, %v3001_v6   ;;  %1604 = vperm.xlu0 %2780, %v3001_v6  }
  0x3b   :  { %511 = vmatpush1.bf16.msra.mxu0 %v2432_v21  ;;  %552 = vmatpush1.bf16.msra.mxu1 %v2434_v25 }
  0x3c   :  { %512 = vmatprep.subr.bf16.mxu0 %v2441_v24  ;;  %553 = vmatprep.subr.bf16.mxu1 %v2443_v28 }
  0x3e   :  { %1648 = vperm.xlu1 %2781, %v3008_v9   ;;  %1608 = vperm.xlu0 %2780, %v3008_v9  }
  0x3f   :  { %513 = vmatpush1.bf16.msra.mxu0 %v2440_v29  ;;  %554 = vmatpush1.bf16.msra.mxu1 %v2442_v31  ;;  %v2840_v29 = vld [vmem:[%s3455_s3 + $0x8] sm:$0xff]   ;;  %v2902_v31 = vmov 7  }
  0x40   :  { %514 = vmatprep.subr.bf16.mxu0 %v2449_v30  ;;  %555 = vmatprep.subr.bf16.mxu1 %v2451_v34  ;;  %v2826_v30 = vld [vmem:[%s3454_s2 + $0x28] sm:$0xff]   ;;  %v2829_v34 = vld [vmem:[%s3454_s2 + $0x40] sm:$0xff]  }
  0x42   :  { %2782 = vset.pattern.permute.xlu1 %v2896_v8 }
  0x43   :  { %515 = vmatpush1.bf16.msra.mxu0 %v2448_v37  ;;  %556 = vmatpush1.bf16.msra.mxu1 %v2450_v39 }
  0x44   :  { %516 = vmatprep.subr.bf16.mxu0 %v2457_v38  ;;  %557 = vmatprep.subr.bf16.mxu1 %v2459_v42 }
  0x45   :  { %1616 = vperm.xlu1 %2782, %v3015_v10  }
  0x47   :  { %517 = vmatpush1.bf16.msra.mxu0 %v2456_v45  ;;  %558 = vmatpush1.bf16.msra.mxu1 %v2458_v47  ;;  %v2832_v45 = vld [vmem:[%s3454_s2 + $0x58] sm:$0xff]   ;;  %v2834_v47 = vld [vmem:[%s3454_s2 + $0x68] sm:$0xff]  }
  0x48   :  { %518 = vmatprep.subr.bf16.mxu0 %v2465_v46  ;;  %559 = vmatprep.subr.bf16.mxu1 %v2467_v50  ;;  %v2833_v46 = vld [vmem:[%s3454_s2 + $0x60] sm:$0xff]   ;;  %v2841_v50 = vld [vmem:[%s3455_s3 + $0x10] sm:$0xff]  }
  0x49   :  { %2783 = vset.pattern.permute.xlu1 %v2897_v12 }
  0x4a   :  { %1688 = vperm.xlu1 %2783, %v3008_v9  }
  0x4b   :  { %519 = vmatpush1.bf16.msra.mxu0 %v2464_v53  ;;  %560 = vmatpush1.bf16.msra.mxu1 %v2466_v55  ;;  %v2844_v53 = vld [vmem:[%s3455_s3 + $0x28] sm:$0xff]   ;;  %v2845_v55 = vld [vmem:[%s3455_s3 + $0x30] sm:$0xff]   ;;  %s2910_s3 = smov 127  }
  0x4c   :  { %520 = vmatprep.subr.bf16.mxu0 %v2473_v54  ;;  %561 = vmatprep.subr.bf16.mxu1 %v2475_v58  ;;  %v2903_v54 = vmov 9   ;;  %v2905_v58 = vmov 11  }
  0x4e   :  { %2784 = vset.pattern.permute.xlu1 %v2895_v7 }
  0x4f   :  { %521 = vmatpush1.bf16.msra.mxu0 %v2472_v61  ;;  %562 = vmatpush1.bf16.msra.mxu1 %v2474_v63  ;;  %v2908_v61 = vmov 14  }
  0x50   :  { %522 = vmatprep.subr.bf16.mxu0 %v2481_v62  ;;  %563 = vmatprep.subr.bf16.mxu1 %v2483_v1  ;;  %v2909_v1 = vmov 13  }
  0x53   :  { %523 = vmatpush1.bf16.msra.mxu0 %v2480_v2  ;;  %564 = vmatpush1.bf16.msra.mxu1 %v2482_v3 }
  0x56   :  { %541 = vmatmul.mubr.bf16.vlgmr.msra.gmra.mrb[4].mxu0 %v2982_v11  ;;  %582 = vmatmul.mubr.bf16.vlgmr.msra.gmra.mrb[4].mxu1 %v2982_v11  ;;  %v3020_v11 = vld [vmem:[%s3456_s4 + $0x10] sm:$0xff]  ;;  %s2920_s4 = smov 117  }
  0x57   :  { %2626 = vmatprep.mubr.msk.bf16.mxu0 %vm609_vm0, %v2823_v4  ;;  %2620 = vmatprep.mubr.msk.bf16.mxu1 %vm609_vm0, %v2835_v5 }
  0x58   :  { %1612 = vperm.xlu0 %2780, %v3020_v11   ;;  %1652 = vperm.xlu1 %2784, %v3020_v11  }
  0x5c   :  { %2785 = vset.pattern.permute.xlu0 %v2895_v7  ;;  %2787 = vset.pattern.permute.xlu1 %v2898_v13 }
  0x5d   :  { %1656 = vperm.xlu0 %2785, %v3015_v10   ;;  %1724 = vperm.xlu1 %2787, %v3001_v6  }
  0x61   :  { %2786 = vset.pattern.permute.xlu0 %v2897_v12  ;;  %1728 = vperm.xlu1 %2787, %v3008_v9  }
  0x62   :  { %1684 = vperm.xlu0 %2786, %v3001_v6  }
  0x65   :  { %2788 = vset.pattern.permute.xlu1 %v2897_v12 }
  0x66   :  { %1692 = vperm.xlu0 %2786, %v3020_v11   ;;  %1696 = vperm.xlu1 %2788, %v3015_v10  }
  0x6a   :  { %2790 = vset.pattern.permute.xlu0 %v2899_v14  ;;  %2789 = vset.pattern.permute.xlu1 %v2899_v14 }
  0x6b   :  { %1768 = vperm.xlu0 %2790, %v3008_v9   ;;  %1764 = vperm.xlu1 %2789, %v3001_v6  }
  0x6f   :  { %1776 = vperm.xlu0 %2790, %v3015_v10   ;;  %2791 = vset.pattern.permute.xlu1 %v2898_v13 }
  0x70   :  { %1732 = vperm.xlu1 %2791, %v3020_v11  }
  0x73   :  { %2794 = vset.pattern.permute.xlu0 %v2900_v15 }
  0x74   :  { %1804 = vperm.xlu0 %2794, %v3001_v6   ;;  %1736 = vperm.xlu1 %2791, %v3015_v10  }
  0x78   :  { %1812 = vperm.xlu0 %2794, %v3020_v11   ;;  %2792 = vset.pattern.permute.xlu1 %v2900_v15 }
  0x79   :  { %1808 = vperm.xlu1 %2792, %v3008_v9  }
  0x7c   :  { %2798 = vset.pattern.permute.xlu0 %v2901_v16 }
  0x7d   :  { %1888 = vperm.xlu0 %2798, %v3008_v9   ;;  %2793 = vset.pattern.permute.xlu1 %v2899_v14 }
  0x7e   :  { %1772 = vperm.xlu1 %2793, %v3020_v11  }
  0x81   :  { %1896 = vperm.xlu0 %2798, %v3015_v10  }
  0x82   :  { %2795 = vset.pattern.permute.xlu1 %v2902_v31 }
  0x83   :  { %1844 = vperm.xlu1 %2795, %v3001_v6  }
  0x85   :  { %2802 = vset.pattern.permute.xlu0 %v2903_v54 }
  0x86   :  { %1924 = vperm.xlu0 %2802, %v3001_v6  }
  0x87   :  { %1848 = vperm.xlu1 %2795, %v3008_v9  }
  0x8a   :  { %1932 = vperm.xlu0 %2802, %v3020_v11  }
  0x8b   :  { %2796 = vset.pattern.permute.xlu1 %v2900_v15 }
  0x8c   :  { %1816 = vperm.xlu1 %2796, %v3015_v10  }
  0x8e   :  { %2806 = vset.pattern.permute.xlu0 %v2905_v58 }
  0x8f   :  { %2008 = vperm.xlu0 %2806, %v3008_v9  }
  0x90   :  { %2797 = vset.pattern.permute.xlu1 %v2901_v16 }
  0x91   :  { %1884 = vperm.xlu1 %2797, %v3001_v6  }
  0x93   :  { %2016 = vperm.xlu0 %2806, %v3015_v10  }
  0x95   :  { %2799 = vset.pattern.permute.xlu1 %v2902_v31 }
  0x96   :  { %1852 = vperm.xlu1 %2799, %v3020_v11  }
  0x97   :  { %2810 = vset.pattern.permute.xlu0 %v2906_v59 }
  0x98   :  { %2044 = vperm.xlu0 %2810, %v3001_v6  }
  0x9a   :  { %1856 = vperm.xlu1 %2799, %v3015_v10  }
  0x9c   :  { %2052 = vperm.xlu0 %2810, %v3020_v11  }
  0x9e   :  { %2800 = vset.pattern.permute.xlu1 %v2903_v54 }
  0x9f   :  { %1928 = vperm.xlu1 %2800, %v3008_v9  }
  0xa0   :  { %2815 = vset.pattern.permute.xlu0 %v2907_v60 }
  0xa1   :  { %2164 = vperm.xlu0 %2815, %v3001_v6  }
  0xa3   :  { %2801 = vset.pattern.permute.xlu1 %v2901_v16 }
  0xa4   :  { %1892 = vperm.xlu1 %2801, %v3020_v11  }
  0xa5   :  { %2816 = vset.pattern.permute.xlu0 %v2908_v61 }
  0xa6   :  { %2128 = vperm.xlu0 %2816, %v3008_v9  }
  0xa8   :  { %2803 = vset.pattern.permute.xlu1 %v2904_v57 }
  0xa9   :  { %1964 = vperm.xlu1 %2803, %v3001_v6  }
  0xaa   :  { %2136 = vperm.xlu0 %2816, %v3015_v10  }
  0xad   :  { %1968 = vperm.xlu1 %2803, %v3008_v9  }
  0xae   :  { %2820 = vset.pattern.permute.xlu0 %v2894_v0 }
  0xaf   :  { %1577 = vperm.xlu0 %2820, %v3001_v6  }
  0xb1   :  { %2804 = vset.pattern.permute.xlu1 %v2903_v54 }
  0xb2   :  { %1936 = vperm.xlu1 %2804, %v3015_v10  }
  0xb3   :  { %1592 = vperm.xlu0 %2820, %v3015_v10  }
  0xb6   :  { %2805 = vset.pattern.permute.xlu1 %v2905_v58 }
  0xb7   :  { %2004 = vperm.xlu1 %2805, %v3001_v6   ;;  %2822 = vset.pattern.permute.xlu0 %v2907_v60 }
  0xb9   :  { %v1645_v31 = vpop.permute.xlu1 %1644 }
  0xbb   :  { %2807 = vset.pattern.permute.xlu1 %v2904_v57 }
  0xbc   :  { %1972 = vperm.xlu1 %2807, %v3020_v11  }
  0xc0   :  { %1976 = vperm.xlu1 %2807, %v3015_v10  }
  0xc4   :  { %2808 = vset.pattern.permute.xlu1 %v2906_v59 }
  0xc5   :  { %2048 = vperm.xlu1 %2808, %v3008_v9  }
  0xc9   :  { %2809 = vset.pattern.permute.xlu1 %v2905_v58 }
  0xca   :  { %2012 = vperm.xlu1 %2809, %v3020_v11  }
  0xce   :  { %2811 = vset.pattern.permute.xlu1 %v2909_v1 }
  0xcf   :  { %2084 = vperm.xlu1 %2811, %v3001_v6  }
  0xd3   :  { %2088 = vperm.xlu1 %2811, %v3008_v9  }
  0xd7   :  { %2812 = vset.pattern.permute.xlu1 %v2906_v59 }
  0xd8   :  { %2056 = vperm.xlu1 %2812, %v3015_v10  }
  0xdc   :  { %2813 = vset.pattern.permute.xlu1 %v2908_v61 }
  0xdd   :  { %2124 = vperm.xlu1 %2813, %v3001_v6  }
  0xe1   :  { %2814 = vset.pattern.permute.xlu1 %v2909_v1 }
  0xe2   :  { %2092 = vperm.xlu1 %2814, %v3020_v11  }
  0xe6   :  { %2096 = vperm.xlu1 %2814, %v3015_v10  }
  0xea   :  { %2817 = vset.pattern.permute.xlu1 %v2907_v60 }
  0xeb   :  { %2168 = vperm.xlu1 %2817, %v3008_v9  }
  0xef   :  { %2818 = vset.pattern.permute.xlu1 %v2908_v61 }
  0xf0   :  { %2132 = vperm.xlu1 %2818, %v3020_v11  }
  0xf4   :  { %2819 = vset.pattern.permute.xlu1 %v2907_v60 }
  0xf5   :  { %2172 = vperm.xlu1 %2819, %v3020_v11  }
  0xf9   :  { %2176 = vperm.xlu1 %2819, %v3015_v10  }
  0xfd   :  { %2821 = vset.pattern.permute.xlu1 %v2894_v0 }
  0xfe   :  { %1582 = vperm.xlu1 %2821, %v3008_v9  }
 0x102   :  { %1587 = vperm.xlu1 %2821, %v3020_v11  }
 0x109   :  { %v460_v18 = vpop.f32.mrb[0].mxu0  ;;  %v501_v21 = vpop.f32.mrb[0].mxu1 }
 0x10a   :  { %v462_v20 = vpop.f32.mrb[1].mxu0  ;;  %2624 = vmatprep.subr.mxu0 %v460_v18  ;;  %v503_v24 = vpop.f32.mrb[1].mxu1 }
 0x10b   :  { %v464_v23 = vpop.f32.mrb[2].mxu0  ;;  %2618 = vmatprep.subr.mxu1 %v462_v20  ;;  %2625 = vmatpush3.msra.mxu0 %v460_v18  ;;  %v505_v26 = vpop.f32.mrb[2].mxu1 }
 0x10c   :  { %v465_v25 = vpop.f32.mrb[3].mxu0  ;;  %2619 = vmatpush3.msra.mxu1 %v462_v20  ;;  %2627 = vmatmul.mubr.msk.bf16.vlgmr.msra.gmra.mrb[8].mxu0 %vm609_vm0, %v2824_v17  ;;  %v506_v28 = vpop.f32.mrb[3].mxu1 }
 0x10d   :  { %2630 = vmatprep.subr.mxu0 %v501_v21  ;;  %2632 = vmatprep.mubr.msk.bf16.mxu0 %vm609_vm0, %v2825_v19 }
 0x10e   :  { %2631 = vmatpush3.msra.mxu0 %v501_v21  ;;  %2621 = vmatmul.mubr.msk.bf16.vlgmr.msra.gmra.mrb[8].mxu1 %vm609_vm0, %v2837_v22 }
 0x10f   :  { %2636 = vmatprep.subr.mxu0 %v503_v24  ;;  %2666 = vmatprep.subr.bf16.mxu1 %v2839_v27 }
 0x110   :  { %2667 = vmatpush3.bf16.msra.mxu1 %v2839_v27 }
 0x111   :  { %2668 = vmatprep.subr.bf16.mxu1 %v2840_v29 }
 0x114   :  { %2669 = vmatpush3.bf16.msra.mxu1 %v2840_v29 }
 0x115   :  { %2670 = vmatprep.subr.bf16.mxu1 %v2841_v50 }
 0x118   :  { %2633 = vmatmul.mubr.msk.bf16.vlgmr.msra.gmra.mrb[8].mxu0 %vm609_vm0, %v2826_v30  ;;  %2671 = vmatpush3.bf16.msra.mxu1 %v2841_v50 }
 0x119   :  { %2637 = vmatpush3.msra.mxu0 %v503_v24  ;;  %2638 = vmatprep.mubr.msk.bf16.mxu0 %vm609_vm0, %v2827_v32  ;;  %v1649_v32 = vpop.permute.xlu1 %1648 }
 0x11a   :  { %2672 = vmatprep.subr.bf16.mxu1 %v2842_v51 }
 0x11c   :  { %2673 = vmatpush3.bf16.msra.mxu1 %v2842_v51 }
 0x11d   :  { %2674 = vmatprep.subr.bf16.mxu1 %v2843_v52 }
 0x120   :  { %2675 = vmatpush3.bf16.msra.mxu1 %v2843_v52 }
 0x121   :  { %2676 = vmatprep.subr.bf16.mxu1 %v2844_v53 }
 0x124   :  { %2639 = vmatmul.mubr.msk.bf16.vlgmr.msra.gmra.mrb[8].mxu0 %vm609_vm0, %v2828_v33  ;;  %2677 = vmatpush3.bf16.msra.mxu1 %v2844_v53  ;;  %v3167_v33 = vpop.permute.xlu1 %1616 }
 0x125   :  { %2644 = vmatprep.mubr.msk.bf16.mxu0 %vm609_vm0, %v2829_v34  ;;  %2678 = vmatprep.subr.bf16.mxu1 %v2845_v55 }
 0x128   :  { %2679 = vmatpush3.bf16.msra.mxu1 %v2845_v55  ;;  %v1689_v34 = vpop.permute.xlu1 %1688 }
 0x129   :  { %v542_v35 = vpop.f32.mrb[4].mxu0  ;;  %v583_v37 = vpop.f32.mrb[4].mxu1  ;;  %2680 = vmatprep.subr.bf16.mxu1 %v2846_v56 }
 0x12a   :  { %v544_v36 = vpop.f32.mrb[5].mxu0  ;;  %2642 = vmatprep.subr.mxu0 %v542_v35  ;;  %v585_v39 = vpop.f32.mrb[5].mxu1 }
 0x12b   :  { %v546_v38 = vpop.f32.mrb[6].mxu0  ;;  %2643 = vmatpush3.msra.mxu0 %v542_v35  ;;  %v587_v42 = vpop.f32.mrb[6].mxu1 }
 0x12c   :  { %v547_v40 = vpop.f32.mrb[7].mxu0  ;;  %2648 = vmatprep.subr.mxu0 %v544_v36  ;;  %v588_v44 = vpop.f32.mrb[7].mxu1  ;;  %2681 = vmatpush3.bf16.msra.mxu1 %v2846_v56 }
 0x12d   :  { %v3169_v35 = vpop.permute.xlu1 %1652 }
 0x130   :  { %2645 = vmatmul.mubr.msk.bf16.vlgmr.msra.gmra.mrb[8].mxu0 %vm609_vm0, %v2830_v41 }
 0x131   :  { %2649 = vmatpush3.msra.mxu0 %v544_v36  ;;  %2650 = vmatprep.mubr.msk.bf16.mxu0 %vm609_vm0, %v2831_v43  ;;  %v3171_v36 = vpop.permute.xlu1 %1724 }
 0x132   :  { %2654 = vmatprep.subr.mxu0 %v583_v37 }
 0x13c   :  { %2651 = vmatmul.mubr.msk.bf16.vlgmr.msra.gmra.mrb[8].mxu0 %vm609_vm0, %v2832_v45 }
 0x13d   :  { %2655 = vmatpush3.msra.mxu0 %v583_v37  ;;  %2656 = vmatprep.mubr.msk.bf16.mxu0 %vm609_vm0, %v2833_v46  ;;  %v1729_v37 = vpop.permute.xlu1 %1728 }
 0x13e   :  { %2660 = vmatprep.subr.mxu0 %v585_v39 }
 0x141   :  { %v3173_v38 = vpop.permute.xlu1 %1696 }
 0x148   :  { %2657 = vmatmul.mubr.msk.bf16.vlgmr.msra.gmra.mrb[8].mxu0 %vm609_vm0, %v2834_v47  ;;  %v1605_v47 = vpop.permute.xlu0 %1604 }
 0x149   :  { %2661 = vmatpush3.msra.mxu0 %v585_v39  ;;  %2662 = vmatprep.mubr.msk.bf16.mxu0 %vm609_vm0, %v2836_v48  ;;  %v3175_v39 = vpop.permute.xlu1 %1764 }
 0x14d   :  { %v3177_v40 = vpop.permute.xlu1 %1732 }
 0x151   :  { %v3179_v41 = vpop.permute.xlu1 %1736 }
 0x154   :  { %2663 = vmatmul.mubr.msk.bf16.vlgmr.msra.gmra.mrb[8].mxu0 %vm609_vm0, %v2838_v49  ;;  %v1609_v49 = vpop.permute.xlu0 %1608 }
 0x155   :  { %v3181_v42 = vpop.permute.xlu1 %1808 }
 0x158   :  { %v3195_v51 = vpop.permute.xlu0 %1612 }
 0x159   :  { %v3183_v43 = vpop.permute.xlu1 %1772 }
 0x15c   :  { %v3199_v53 = vpop.permute.xlu0 %1656 }
 0x15d   :  { %v3185_v44 = vpop.permute.xlu1 %1844 }
 0x160   :  { %v1685_v55 = vpop.permute.xlu0 %1684 }
 0x161   :  { %v3187_v45 = vpop.permute.xlu1 %1848 }
 0x164   :  { %v3205_v57 = vpop.permute.xlu0 %1692 }
 0x165   :  { %v3189_v46 = vpop.permute.xlu1 %1816 }
 0x168   :  { %v1769_v59 = vpop.permute.xlu0 %1768 }
 0x169   :  { %v3191_v48 = vpop.permute.xlu1 %1884 }
 0x16c   :  { %v3211_v61 = vpop.permute.xlu0 %1776 }
 0x16d   :  { %v3193_v50 = vpop.permute.xlu1 %1852 }
 0x171   :  { %v3197_v52 = vpop.permute.xlu1 %1856 }
 0x175   :  { %v3201_v54 = vpop.permute.xlu1 %1928 }
 0x179   :  { %v3203_v56 = vpop.permute.xlu1 %1892 }
 0x17d   :  { %v3207_v58 = vpop.permute.xlu1 %1964 }
 0x181   :  { %v3209_v60 = vpop.permute.xlu1 %1968 }
 0x1e1   :  { %v2622_v62 = vpop.f32.mrb[8].mxu1 }
 0x1e2   :  { %v682_v63 = vpop.f32.mrb[9].mxu1 }
 0x1e3   :  { %v2623_v2 = vpop.f32.mrb[10].mxu1 }
 0x1e4   :  { %v685_v3 = vpop.f32.mrb[11].mxu1 }
 0x227   :  { %v2664_v4 = vpop.f32.mrb[8].mxu0 }
 0x228   :  { %v2718_v5 = vadd.f32 %v2664_v4, %v2622_v62  ;;  %v1411_v6 = vpop.f32.mrb[9].mxu0  ;;  %v3213_v62 = vpop.permute.xlu1 %1936 }
 0x229   :  { %v2719_v7 = vadd.f32 %v1411_v6, %v682_v63  ;;  %v2665_v8 = vpop.f32.mrb[10].mxu0  ;;  %v1805_v63 = vpop.permute.xlu0 %1804 }
 0x22a   :  { %v1432_v12 = vmul.f32 0.999001, %v2718_v5  ;;  %v2720_v13 = vadd.f32 %v2665_v8, %v2623_v2  ;;  %v1414_v14 = vpop.f32.mrb[11].mxu0 }
 0x22b   :  { %v1430_v15 = vmul.f32 0.999001, %v2719_v7  ;;  %v2721_v16 = vadd.f32 %v1414_v14, %v685_v3 }
 0x22c   :  { %v1442_v17 = vmul.f32 1.442695, %v1432_v12  ;;  %v1433_v18 = vmul.f32 0.999001, %v2720_v13  ;;  %vm1436_vm3 = vcmp.gt.f32.partialorder %v1432_v12, 0.0  ;;  %v3215_v1 = vpop.permute.xlu1 %2004 }
 0x22d   :  { %v1438_v19 = vmul.f32 1.442695, %v1430_v15  ;;  %v1431_v10 = vmul.f32 0.999001, %v2721_v16  ;;  %vm1434_vm1 = vcmp.gt.f32.partialorder %v1430_v15, 0.0  ;;  %v3217_v2 = vpop.permute.xlu0 %1812 }
 0x22e   :  { %2851 = vpow2.f32 %v1442_v17  ;;  %v1444_v0 = vmul.f32 1.442695, %v1433_v18  ;;  %vm1437_vm4 = vcmp.gt.f32.partialorder %v1433_v18, 0.0 }
 0x22f   :  { %2853 = vpow2.f32 %v1438_v19  ;;  %v1440_v9 = vmul.f32 1.442695, %v1431_v10  ;;  %vm1435_vm2 = vcmp.gt.f32.partialorder %v1431_v10, 0.0 }
 0x230   :  { %2855 = vpow2.f32 %v1444_v0  ;;  %v3219_v3 = vpop.permute.xlu1 %1972 }
 0x231   :  { %2857 = vpow2.f32 %v1440_v9  ;;  %v1889_v4 = vpop.permute.xlu0 %1888 }
 0x234   :  { %v3221_v5 = vpop.permute.xlu1 %1976 }
 0x235   :  { %v3223_v6 = vpop.permute.xlu0 %1896 }
 0x238   :  { %v2852_v11 = vpop.eup %2851  ;;  %v3225_v7 = vpop.permute.xlu1 %2048 }
 0x239   :  { %v2854_v20 = vpop.eup %2853  ;;  %v2546_v24 = vadd.f32 -1.0, %v2852_v11  ;;  %v1925_v8 = vpop.permute.xlu0 %1924 }
 0x23a   :  { %v2856_v21 = vpop.eup %2855  ;;  %v2544_v22 = vadd.f32 -1.0, %v2854_v20 }
 0x23b   :  { %v2858_v23 = vpop.eup %2857  ;;  %v2547_v28 = vadd.f32 -1.0, %v2856_v21  ;;  %v1452_v29 = vsel %vm1436_vm3, %v1432_v12, %v2546_v24 }
 0x23c   :  { %v1450_v25 = vsel %vm1434_vm1, %v1430_v15, %v2544_v22  ;;  %v2545_v26 = vadd.f32 -1.0, %v2858_v23  ;;  %v3227_v12 = vpop.permute.xlu1 %2012 }
 0x23d   :  { %2682 = vmatprep.mubr.f32.mxu1 %v1450_v25  ;;  %v1453_v30 = vsel %vm1437_vm4, %v1433_v18, %v2547_v28  ;;  %v1933_v13 = vpop.permute.xlu0 %1932 }
 0x23e   :  { %v1451_v27 = vsel %vm1435_vm2, %v1431_v10, %v2545_v26 }
 0x23f   :  { %2683 = vmatmul.mubr.f32.vlgmr.msra.gmra.mrb[12].mxu1 %v1451_v27 }
 0x240   :  { %2685 = vmatprep.mubr.f32.mxu1 %v1452_v29  ;;  %v3231_v15 = vpop.permute.xlu1 %2084 }
 0x241   :  { %v2009_v9 = vpop.permute.xlu0 %2008 }
 0x243   :  { %2686 = vmatmul.mubr.f32.gmra.mrb[14].mxu1 %v1453_v30 }
 0x244   :  { %v3245_v20 = vpop.permute.xlu1 %2088 }
 0x245   :  { %v2017_v23 = vpop.permute.xlu0 %2016 }
 0x248   :  { %v2057_v25 = vpop.permute.xlu1 %2056 }
 0x312   :  { %v3229_v14 = vpop.f32.mrb[12].mxu1 }
 0x313   :  { %v3233_v16 = vpop.f32.mrb[13].mxu1  ;;  %v1620_v17 = vmul.f32 %v3229_v14, %v1609_v49  ;;  %v1660_v0 = vmul.f32 %v3229_v14, %v1649_v32  ;;  %v1700_v21 = vmul.f32 %v3229_v14, %v1689_v34  ;;  %v1740_v26 = vmul.f32 %v3229_v14, %v1729_v37 }
 0x314   :  { %v1619_v18 = vmul.f32 %v1605_v47, %v3233_v16  ;;  %v1659_v11 = vmul.f32 %v1645_v31, %v3233_v16  ;;  %v1699_v22 = vmul.f32 %v1685_v55, %v3233_v16  ;;  %v1739_v28 = vmul.f32 %v3171_v36, %v3233_v16  ;;  %v2045_v47 = vpop.permute.xlu0 %2044 }
 0x315   :  { %1629 = vrot.lane.b32.xlu0 %v1620_v17, %s2910_s3  ;;  %v1780_v30 = vmul.f32 %v3229_v14, %v1769_v59  ;;  %v1779_v31 = vmul.f32 %v3175_v39, %v3233_v16  ;;  %v1820_v32 = vmul.f32 %v3229_v14, %v3181_v42  ;;  %v1819_v34 = vmul.f32 %v1805_v63, %v3233_v16 }
 0x316   :  { %1627 = vrot.lane.b32.xlu1 %v1619_v18, %s2910_s3  ;;  %v3239_v19 = vpop.f32.mrb[14].mxu1  ;;  %v1860_v36 = vmul.f32 %v3229_v14, %v3187_v45  ;;  %v1859_v37 = vmul.f32 %v3185_v44, %v3233_v16  ;;  %v1900_v39 = vmul.f32 %v3229_v14, %v1889_v4  ;;  %v1899_v42 = vmul.f32 %v3191_v48, %v3233_v16  ;;  %v2125_v48 = vpop.permute.xlu1 %2124 }
 0x317   :  { %v3241_v10 = vpop.f32.mrb[15].mxu1  ;;  %v3258_v27 = vmul.f32 %v3239_v19, %v2017_v23  ;;  %v3263_v29 = vmul.f32 %v3239_v19, %v2057_v25  ;;  %v1940_v45 = vmul.f32 %v3229_v14, %v3201_v54  ;;  %v1939_v44 = vmul.f32 %v1925_v8, %v3233_v16 }
 0x318   :  { %v3254_v24 = vmul.f32 %v1933_v13, %v3241_v10  ;;  %v1980_v49 = vmul.f32 %v3229_v14, %v3209_v60  ;;  %v1979_v55 = vmul.f32 %v3207_v58, %v3233_v16  ;;  %v3298_v59 = vpop.permute.xlu0 %2052  ;;  %v2020_v54 = vmul.f32 %v3229_v14, %v2009_v9 }
 0x319   :  { %1669 = vrot.lane.b32.xlu0 %v1660_v0, %s2911_s18  ;;  %v2019_v63 = vmul.f32 %v3215_v1, %v3233_v16  ;;  %v2060_v58 = vmul.f32 %v3229_v14, %v3225_v7  ;;  %v2059_v8 = vmul.f32 %v2045_v47, %v3233_v16  ;;  %v2100_v1 = vmul.f32 %v3229_v14, %v3245_v20 }
 0x31a   :  { %1667 = vrot.lane.b32.xlu1 %v1659_v11, %s2911_s18  ;;  %v3305_v60 = vpop.permute.xlu1 %2092  ;;  %v2099_v17 = vmul.f32 %v3231_v15, %v3233_v16  ;;  %v2139_v0 = vmul.f32 %v2125_v48, %v3233_v16  ;;  %v1622_v20 = vmul.f32 %v3239_v19, %v3167_v33  ;;  %v1661_v23 = vmul.f32 %v3169_v35, %v3241_v10 }
 0x31b   :  { %v1702_v33 = vmul.f32 %v3239_v19, %v3173_v38  ;;  %v1741_v35 = vmul.f32 %v3177_v40, %v3241_v10  ;;  %v1782_v38 = vmul.f32 %v3239_v19, %v3211_v61  ;;  %v1821_v40 = vmul.f32 %v3217_v2, %v3241_v10 }
 0x31c   :  { %v2165_v4 = vpop.permute.xlu0 %2164  ;;  %v1862_v61 = vmul.f32 %v3239_v19, %v3197_v52  ;;  %v1901_v2 = vmul.f32 %v3203_v56, %v3241_v10  ;;  %v1942_v52 = vmul.f32 %v3239_v19, %v3213_v62  ;;  %v2021_v62 = vmul.f32 %v3227_v12, %v3241_v10 }
 0x31d   :  { %1709 = vrot.lane.b32.xlu0 %v1700_v21, %s2912_s19  ;;  %v2179_v15 = vmul.f32 %v2165_v4, %v3233_v16  ;;  %v1621_v21 = vmul.f32 %v3195_v51, %v3241_v10  ;;  %v1701_v51 = vmul.f32 %v3205_v57, %v3241_v10  ;;  %v1781_v57 = vmul.f32 %v3183_v43, %v3241_v10 }
 0x31e   :  { %1707 = vrot.lane.b32.xlu1 %v1699_v22, %s2912_s19  ;;  %v3315_v13 = vpop.permute.xlu1 %2096  ;;  %v1662_v22 = vmul.f32 %v3239_v19, %v3199_v53  ;;  %v1742_v53 = vmul.f32 %v3239_v19, %v3179_v41  ;;  %v1822_v41 = vmul.f32 %v3239_v19, %v3189_v46  ;;  %v1861_v43 = vmul.f32 %v3193_v50, %v3241_v10 }
 0x31f   :  { %v1902_v46 = vmul.f32 %v3239_v19, %v3223_v6  ;;  %v1982_v6 = vmul.f32 %v3239_v19, %v3221_v5  ;;  %v2061_v5 = vmul.f32 %v3298_v59, %v3241_v10  ;;  %v2101_v12 = vmul.f32 %v3305_v60, %v3241_v10 }
 0x320   :  { %v2129_v7 = vpop.permute.xlu0 %2128 }
 0x321   :  { %1749 = vrot.lane.b32.xlu0 %v1740_v26, %s2913_s20  ;;  %v2140_v18 = vmul.f32 %v3229_v14, %v2129_v7  ;;  %v1981_v26 = vmul.f32 %v3219_v3, %v3241_v10 }
 0x322   :  { %1747 = vrot.lane.b32.xlu1 %v1739_v28, %s2913_s20  ;;  %v2169_v9 = vpop.permute.xlu1 %2168 }
 0x323   :  { %v2180_v11 = vmul.f32 %v3229_v14, %v2169_v9 }
 0x324   :  { %v2137_v56 = vpop.permute.xlu0 %2136 }
 0x325   :  { %1789 = vrot.lane.b32.xlu0 %v1780_v30, %s2914_s21  ;;  %v2102_v30 = vmul.f32 %v3239_v19, %v3315_v13 }
 0x326   :  { %1787 = vrot.lane.b32.xlu1 %v1779_v31, %s2914_s21  ;;  %v2133_v25 = vpop.permute.xlu1 %2132 }
 0x329   :  { %1829 = vrot.lane.b32.xlu0 %v1820_v32, %s2915_s22 }
 0x32a   :  { %1827 = vrot.lane.b32.xlu1 %v1819_v34, %s2915_s22  ;;  %v2173_v50 = vpop.permute.xlu1 %2172  ;;  %v2141_v34 = vmul.f32 %v2133_v25, %v3241_v10 }
 0x32d   :  { %1869 = vrot.lane.b32.xlu0 %v1860_v36, %s2916_s23 }
 0x32e   :  { %1867 = vrot.lane.b32.xlu1 %v1859_v37, %s2916_s23  ;;  %v2177_v28 = vpop.permute.xlu1 %2176 }
 0x32f   :  { %v2182_v37 = vmul.f32 %v3239_v19, %v2177_v28 }
 0x331   :  { %1909 = vrot.lane.b32.xlu0 %v1900_v39, %s2917_s24 }
 0x332   :  { %1907 = vrot.lane.b32.xlu1 %v1899_v42, %s2917_s24  ;;  %v1583_v3 = vpop.permute.xlu1 %1582  ;;  %v2181_v42 = vmul.f32 %v2173_v50, %v3241_v10 }
 0x335   :  { %1949 = vrot.lane.b32.xlu0 %v1940_v45, %s2918_s25 }
 0x336   :  { %1947 = vrot.lane.b32.xlu1 %v1939_v44, %s2918_s25  ;;  %v3410_v32 = vpop.permute.xlu1 %1587 }
 0x339   :  { %1989 = vrot.lane.b32.xlu0 %v1980_v49, %s2919_s26 }
 0x33a   :  { %1987 = vrot.lane.b32.xlu1 %v1979_v55, %s2919_s26 }
 0x33d   :  { %2029 = vrot.lane.b32.xlu0 %v2020_v54, %s2920_s4 }
 0x33e   :  { %2027 = vrot.lane.b32.xlu1 %v2019_v63, %s2920_s4 }
 0x341   :  { %2069 = vrot.lane.b32.xlu0 %v2060_v58, %s2921_s27 }
 0x342   :  { %2067 = vrot.lane.b32.xlu1 %v2059_v8, %s2921_s27  ;;  %v1596_v8 = vmul.f32 %v3229_v14, %v1583_v3 }
 0x345   :  { %2109 = vrot.lane.b32.xlu0 %v2100_v1, %s2922_s28 }
 0x346   :  { %2107 = vrot.lane.b32.xlu1 %v2099_v17, %s2922_s28 }
 0x349   :  { %2149 = vrot.lane.b32.xlu0 %v2140_v18, %s2923_s29 }
 0x34a   :  { %2147 = vrot.lane.b32.xlu1 %v2139_v0, %s2923_s29 }
 0x34d   :  { %2189 = vrot.lane.b32.xlu0 %v2180_v11, %s2924_s30 }
 0x34e   :  { %2187 = vrot.lane.b32.xlu1 %v2179_v15, %s2924_s30 }
 0x351   :  { %1633 = vrot.lane.b32.xlu0 %v1622_v20, %s2910_s3 }
 0x352   :  { %1631 = vrot.lane.b32.xlu1 %v1621_v21, %s2910_s3 }
 0x355   :  { %1673 = vrot.lane.b32.xlu0 %v1662_v22, %s2911_s18 }
 0x356   :  { %1671 = vrot.lane.b32.xlu1 %v1661_v23, %s2911_s18 }
 0x359   :  { %1713 = vrot.lane.b32.xlu0 %v1702_v33, %s2912_s19 }
 0x35a   :  { %1711 = vrot.lane.b32.xlu1 %v1701_v51, %s2912_s19 }
 0x35d   :  { %1753 = vrot.lane.b32.xlu0 %v1742_v53, %s2913_s20 }
 0x35e   :  { %1751 = vrot.lane.b32.xlu1 %v1741_v35, %s2913_s20 }
 0x361   :  { %1793 = vrot.lane.b32.xlu0 %v1782_v38, %s2914_s21 }
 0x362   :  { %1791 = vrot.lane.b32.xlu1 %v1781_v57, %s2914_s21 }
 0x365   :  { %1833 = vrot.lane.b32.xlu0 %v1822_v41, %s2915_s22 }
 0x366   :  { %1831 = vrot.lane.b32.xlu1 %v1821_v40, %s2915_s22 }
 0x369   :  { %1873 = vrot.lane.b32.xlu0 %v1862_v61, %s2916_s23 }
 0x36a   :  { %1871 = vrot.lane.b32.xlu1 %v1861_v43, %s2916_s23 }
 0x36d   :  { %1913 = vrot.lane.b32.xlu0 %v1902_v46, %s2917_s24 }
 0x36e   :  { %1911 = vrot.lane.b32.xlu1 %v1901_v2, %s2917_s24 }
 0x371   :  { %1953 = vrot.lane.b32.xlu0 %v1942_v52, %s2918_s25 }
 0x372   :  { %1951 = vrot.lane.b32.xlu1 %v3254_v24, %s2918_s25  ;;  %v1578_v24 = vpop.permute.xlu0 %1577 }
 0x373   :  { %v1595_v1 = vmul.f32 %v1578_v24, %v3233_v16 }
 0x375   :  { %1993 = vrot.lane.b32.xlu0 %v1982_v6, %s2919_s26 }
 0x376   :  { %1991 = vrot.lane.b32.xlu1 %v1981_v26, %s2919_s26  ;;  %v3407_v31 = vpop.permute.xlu0 %1592 }
 0x379   :  { %2033 = vrot.lane.b32.xlu0 %v3258_v27, %s2920_s4  ;;  %v2847_v27 = vld [vmem:[%s3457_s5] sm:$0xff]  }
 0x37a   :  { %2031 = vrot.lane.b32.xlu1 %v2021_v62, %s2920_s4  ;;  %2696 = vmatprep.mubr.msk.bf16.mxu1 %vm2217_vm5, %v2847_v27 }
 0x37d   :  { %2073 = vrot.lane.b32.xlu0 %v3263_v29, %s2921_s27  ;;  %v2142_v29 = vmul.f32 %v3239_v19, %v2137_v56 }
 0x37e   :  { %2071 = vrot.lane.b32.xlu1 %v2061_v5, %s2921_s27 }
 0x381   :  { %2113 = vrot.lane.b32.xlu0 %v2102_v30, %s2922_s28 }
 0x382   :  { %2111 = vrot.lane.b32.xlu1 %v2101_v12, %s2922_s28 }
 0x385   :  { %2153 = vrot.lane.b32.xlu0 %v2142_v29, %s2923_s29 }
 0x386   :  { %2151 = vrot.lane.b32.xlu1 %v2141_v34, %s2923_s29 }
 0x387   :  { %v1630_v36 = vpop.permute.xlu0 %1629 }
 0x388   :  { %v1628_v39 = vpop.permute.xlu1 %1627  ;;  %v1640_v17 = vadd.f32 %v1630_v36, %v1596_v8 }
 0x389   :  { %2193 = vrot.lane.b32.xlu0 %v2182_v37, %s2924_s30  ;;  %v1639_v18 = vadd.f32 %v1628_v39, %v1595_v1 }
 0x38a   :  { %2191 = vrot.lane.b32.xlu1 %v2181_v42, %s2924_s30 }
 0x38b   :  { %v1670_v45 = vpop.permute.xlu0 %1669 }
 0x38c   :  { %v1668_v47 = vpop.permute.xlu1 %1667  ;;  %v1680_v0 = vadd.f32 %v1670_v45, %v1640_v17  ;;  %v1598_v17 = vmul.f32 %v3239_v19, %v3407_v31 }
 0x38d   :  { %v1679_v9 = vadd.f32 %v1668_v47, %v1639_v18 }
 0x38f   :  { %v1710_v44 = vpop.permute.xlu0 %1709 }
 0x390   :  { %v1708_v49 = vpop.permute.xlu1 %1707  ;;  %v1720_v15 = vadd.f32 %v1710_v44, %v1680_v0 }
 0x391   :  { %v1719_v21 = vadd.f32 %v1708_v49, %v1679_v9 }
 0x393   :  { %v1750_v48 = vpop.permute.xlu0 %1749 }
 0x394   :  { %v1748_v55 = vpop.permute.xlu1 %1747  ;;  %v1760_v22 = vadd.f32 %v1750_v48, %v1720_v15 }
 0x395   :  { %v1759_v23 = vadd.f32 %v1748_v55, %v1719_v21 }
 0x397   :  { %v1790_v59 = vpop.permute.xlu0 %1789 }
 0x398   :  { %v1788_v54 = vpop.permute.xlu1 %1787  ;;  %v1800_v51 = vadd.f32 %v1790_v59, %v1760_v22 }
 0x399   :  { %v1799_v35 = vadd.f32 %v1788_v54, %v1759_v23 }
 0x39b   :  { %v1830_v63 = vpop.permute.xlu0 %1829 }
 0x39c   :  { %v1828_v60 = vpop.permute.xlu1 %1827  ;;  %v1840_v38 = vadd.f32 %v1830_v63, %v1800_v51 }
 0x39d   :  { %v1839_v14 = vadd.f32 %v1828_v60, %v1799_v35 }
 0x39f   :  { %v1870_v58 = vpop.permute.xlu0 %1869 }
 0x3a0   :  { %v1868_v4 = vpop.permute.xlu1 %1867  ;;  %v1880_v16 = vadd.f32 %v1870_v58, %v1840_v38 }
 0x3a1   :  { %v1879_v40 = vadd.f32 %v1868_v4, %v1839_v14 }
 0x3a3   :  { %v1910_v13 = vpop.permute.xlu0 %1909 }
 0x3a4   :  { %v1908_v7 = vpop.permute.xlu1 %1907  ;;  %v1920_v61 = vadd.f32 %v1910_v13, %v1880_v16 }
 0x3a5   :  { %v1919_v43 = vadd.f32 %v1908_v7, %v1879_v40  ;;  %v1597_v7 = vmul.f32 %v3410_v32, %v3241_v10 }
 0x3a7   :  { %v1950_v11 = vpop.permute.xlu0 %1949 }
 0x3a8   :  { %v1948_v20 = vpop.permute.xlu1 %1947  ;;  %v1960_v25 = vadd.f32 %v1950_v11, %v1920_v61 }
 0x3a9   :  { %v1959_v52 = vadd.f32 %v1948_v20, %v1919_v43 }
 0x3ab   :  { %v1990_v33 = vpop.permute.xlu0 %1989 }
 0x3ac   :  { %v1988_v53 = vpop.permute.xlu1 %1987  ;;  %v2000_v50 = vadd.f32 %v1990_v33, %v1960_v25 }
 0x3ad   :  { %v1999_v6 = vadd.f32 %v1988_v53, %v1959_v52 }
 0x3af   :  { %v2030_v57 = vpop.permute.xlu0 %2029 }
 0x3b0   :  { %v2028_v41 = vpop.permute.xlu1 %2027  ;;  %v2040_v56 = vadd.f32 %v2030_v57, %v2000_v50 }
 0x3b1   :  { %v2039_v62 = vadd.f32 %v2028_v41, %v1999_v6 }
 0x3b3   :  { %v2070_v46 = vpop.permute.xlu0 %2069 }
 0x3b4   :  { %v2068_v2 = vpop.permute.xlu1 %2067  ;;  %v2080_v5 = vadd.f32 %v2070_v46, %v2040_v56 }
 0x3b5   :  { %v2079_v24 = vadd.f32 %v2068_v2, %v2039_v62 }
 0x3b7   :  { %v2110_v26 = vpop.permute.xlu0 %2109 }
 0x3b8   :  { %v2108_v28 = vpop.permute.xlu1 %2107  ;;  %v2120_v30 = vadd.f32 %v2110_v26, %v2080_v5 }
 0x3b9   :  { %v2119_v27 = vadd.f32 %v2108_v28, %v2079_v24 }
 0x3bb   :  { %v2150_v3 = vpop.permute.xlu0 %2149 }
 0x3bc   :  { %v2148_v12 = vpop.permute.xlu1 %2147  ;;  %v2160_v29 = vadd.f32 %v2150_v3, %v2120_v30 }
 0x3bd   :  { %v2159_v34 = vadd.f32 %v2148_v12, %v2119_v27 }
 0x3bf   :  { %v2190_v36 = vpop.permute.xlu0 %2189 }
 0x3c0   :  { %v2200_v37 = vadd.f32 %v2190_v36, %v2160_v29  ;;  %v2188_v39 = vpop.permute.xlu1 %2187 }
 0x3c1   :  { %v2199_v42 = vadd.f32 %v2188_v39, %v2159_v34 }
 0x3c3   :  { %v2710_v45 = vpack.c.bf16 %v2200_v37, %v2199_v42  ;;  %v1634_v47 = vpop.permute.xlu0 %1633 }
 0x3c4   :  { %v1632_v44 = vpop.permute.xlu1 %1631  ;;  %v1642_v0 = vadd.f32 %v1634_v47, %v1598_v17  ;;  %v2849_v47 = vld [vmem:[%s3458_s6] sm:$0xff]  }
 0x3c5   :  { %2711 = vmatprep.subr.bf16.mxu1 %v2710_v45  ;;  %v1641_v11 = vadd.f32 %v1632_v44, %v1597_v7  ;;  %v2850_v44 = vld [vmem:[%s3458_s6 + $0x8] sm:$0xff]  }
 0x3c6   :  { %2713 = vmatpush3.bf16.msra.mxu1 %v2710_v45  ;;  %v2848_v45 = vld [vmem:[%s3457_s5 + $0x8] sm:$0xff]  }
 0x3c7   :  { %v1674_v49 = vpop.permute.xlu0 %1673 }
 0x3c8   :  { %v1672_v48 = vpop.permute.xlu1 %1671  ;;  %v1682_v15 = vadd.f32 %v1674_v49, %v1642_v0 }
 0x3c9   :  { %v1681_v20 = vadd.f32 %v1672_v48, %v1641_v11 }
 0x3cb   :  { %v1714_v55 = vpop.permute.xlu0 %1713 }
 0x3cc   :  { %v1712_v59 = vpop.permute.xlu1 %1711  ;;  %v1722_v22 = vadd.f32 %v1714_v55, %v1682_v15 }
 0x3cd   :  { %v1721_v33 = vadd.f32 %v1712_v59, %v1681_v20 }
 0x3cf   :  { %v1754_v54 = vpop.permute.xlu0 %1753 }
 0x3d0   :  { %v1752_v63 = vpop.permute.xlu1 %1751  ;;  %v1762_v51 = vadd.f32 %v1754_v54, %v1722_v22 }
 0x3d1   :  { %v1761_v53 = vadd.f32 %v1752_v63, %v1721_v33 }
 0x3d3   :  { %v1794_v60 = vpop.permute.xlu0 %1793 }
 0x3d4   :  { %v1792_v58 = vpop.permute.xlu1 %1791  ;;  %v1802_v38 = vadd.f32 %v1794_v60, %v1762_v51 }
 0x3d5   :  { %v1801_v57 = vadd.f32 %v1792_v58, %v1761_v53 }
 0x3d7   :  { %v1834_v4 = vpop.permute.xlu0 %1833 }
 0x3d8   :  { %v1832_v8 = vpop.permute.xlu1 %1831  ;;  %v1842_v19 = vadd.f32 %v1834_v4, %v1802_v38 }
 0x3d9   :  { %v1841_v31 = vadd.f32 %v1832_v8, %v1801_v57 }
 0x3db   :  { %v1874_v1 = vpop.permute.xlu0 %1873 }
 0x3dc   :  { %v1872_v13 = vpop.permute.xlu1 %1871  ;;  %v1882_v10 = vadd.f32 %v1874_v1, %v1842_v19 }
 0x3dd   :  { %v1881_v41 = vadd.f32 %v1872_v13, %v1841_v31 }
 0x3df   :  { %v1914_v18 = vpop.permute.xlu0 %1913 }
 0x3e0   :  { %v1912_v9 = vpop.permute.xlu1 %1911  ;;  %v1922_v40 = vadd.f32 %v1914_v18, %v1882_v10 }
 0x3e1   :  { %v1921_v61 = vadd.f32 %v1912_v9, %v1881_v41 }
 0x3e3   :  { %v1954_v21 = vpop.permute.xlu0 %1953 }
 0x3e4   :  { %v1952_v23 = vpop.permute.xlu1 %1951  ;;  %v1962_v46 = vadd.f32 %v1954_v21, %v1922_v40 }
 0x3e5   :  { %v1961_v2 = vadd.f32 %v1952_v23, %v1921_v61 }
 0x3e7   :  { %v1994_v35 = vpop.permute.xlu0 %1993 }
 0x3e8   :  { %v1992_v14 = vpop.permute.xlu1 %1991  ;;  %v2002_v52 = vadd.f32 %v1994_v35, %v1962_v46 }
 0x3e9   :  { %v2001_v50 = vadd.f32 %v1992_v14, %v1961_v2 }
 0x3eb   :  { %v2034_v16 = vpop.permute.xlu0 %2033 }
 0x3ec   :  { %v2032_v32 = vpop.permute.xlu1 %2031  ;;  %v2042_v26 = vadd.f32 %v2034_v16, %v2002_v52 }
 0x3ed   :  { %v2041_v28 = vadd.f32 %v2032_v32, %v2001_v50 }
 0x3ef   :  { %v2074_v43 = vpop.permute.xlu0 %2073 }
 0x3f0   :  { %v2072_v25 = vpop.permute.xlu1 %2071  ;;  %v2082_v62 = vadd.f32 %v2074_v43, %v2042_v26 }
 0x3f1   :  { %v2081_v5 = vadd.f32 %v2072_v25, %v2041_v28 }
 0x3f3   :  { %v2114_v6 = vpop.permute.xlu0 %2113 }
 0x3f4   :  { %v2112_v56 = vpop.permute.xlu1 %2111  ;;  %v2122_v3 = vadd.f32 %v2114_v6, %v2082_v62 }
 0x3f5   :  { %v2121_v12 = vadd.f32 %v2112_v56, %v2081_v5 }
 0x3f7   :  { %v2154_v24 = vpop.permute.xlu0 %2153 }
 0x3f8   :  { %v2152_v30 = vpop.permute.xlu1 %2151  ;;  %v2162_v27 = vadd.f32 %v2154_v24, %v2122_v3 }
 0x3f9   :  { %v2161_v29 = vadd.f32 %v2152_v30, %v2121_v12 }
 0x3fb   :  { %v2194_v34 = vpop.permute.xlu0 %2193 }
 0x3fc   :  { %v2202_v36 = vadd.f32 %v2194_v34, %v2162_v27  ;;  %v2192_v37 = vpop.permute.xlu1 %2191 }
 0x3fd   :  { %v2201_v39 = vadd.f32 %v2192_v37, %v2161_v29 }
 0x3ff   :  { %v2714_v42 = vpack.c.bf16 %v2202_v36, %v2201_v39 }
 0x401   :  { %2715 = vmatprep.subr.bf16.mxu1 %v2714_v42 }
 0x402   :  { %2717 = vmatpush3.bf16.msra.mxu1 %v2714_v42 }
 0x403   :  { %2700 = vmatprep.subr.bf16.mxu1 %v2849_v47 }
 0x405   :  { %2697 = vmatmul.mubr.msk.bf16.vlgmr.msra.gmra.mrb[16].mxu1 %vm2217_vm5, %v2848_v45 }
 0x406   :  { %2701 = vmatpush3.bf16.msra.mxu1 %v2849_v47 }
 0x407   :  { %2702 = vmatprep.subr.bf16.mxu1 %v2850_v44 }
 0x40a   :  { %2703 = vmatpush3.bf16.msra.mxu1 %v2850_v44 }
 0x4d8   :  { %v2698_v49 = vpop.f32.mrb[16].mxu1 }
 0x4d9   :  { %v2307_v48 = vmul.f32 0.9995004, %v2698_v49  ;;  %v2290_v55 = vpop.f32.mrb[17].mxu1 }
 0x4da   :  { %v2305_v59 = vmul.f32 0.9995004, %v2290_v55  ;;  %v2699_v54 = vpop.f32.mrb[18].mxu1 }
 0x4db   :  { %v2317_v63 = vmul.f32 1.442695, %v2307_v48  ;;  %v2308_v60 = vmul.f32 0.9995004, %v2699_v54  ;;  %v2293_v58 = vpop.f32.mrb[19].mxu1  ;;  %vm2311_vm8 = vcmp.gt.f32.partialorder %v2307_v48, 0.0 }
 0x4dc   :  { %v2313_v4 = vmul.f32 1.442695, %v2305_v59  ;;  %v2306_v8 = vmul.f32 0.9995004, %v2293_v58  ;;  %vm2309_vm6 = vcmp.gt.f32.partialorder %v2305_v59, 0.0 }
 0x4dd   :  { %2859 = vpow2.f32 %v2317_v63  ;;  %v2319_v1 = vmul.f32 1.442695, %v2308_v60  ;;  %vm2312_vm9 = vcmp.gt.f32.partialorder %v2308_v60, 0.0 }
 0x4de   :  { %2861 = vpow2.f32 %v2313_v4  ;;  %v2315_v13 = vmul.f32 1.442695, %v2306_v8  ;;  %vm2310_vm7 = vcmp.gt.f32.partialorder %v2306_v8, 0.0 }
 0x4df   :  { %2863 = vpow2.f32 %v2319_v1 }
 0x4e0   :  { %2865 = vpow2.f32 %v2315_v13 }
 0x4e7   :  { %v2860_v17 = vpop.eup %2859 }
 0x4e8   :  { %v2862_v7 = vpop.eup %2861  ;;  %v2562_v11 = vadd.f32 -1.0, %v2860_v17 }
 0x4e9   :  { %v2864_v18 = vpop.eup %2863  ;;  %v2560_v0 = vadd.f32 -1.0, %v2862_v7 }
 0x4ea   :  { %v2866_v9 = vpop.eup %2865  ;;  %v2563_v22 = vadd.f32 -1.0, %v2864_v18  ;;  %v2327_v23 = vsel %vm2311_vm8, %v2307_v48, %v2562_v11 }
 0x4eb   :  { %v2561_v15 = vadd.f32 -1.0, %v2866_v9  ;;  %v2325_v20 = vsel %vm2309_vm6, %v2305_v59, %v2560_v0 }
 0x4ec   :  { %2704 = vmatprep.mubr.msk.f32.mxu1 %vm2217_vm5, %v2325_v20  ;;  %v2328_v33 = vsel %vm2312_vm9, %v2308_v60, %v2563_v22 }
 0x4ed   :  { %v2326_v21 = vsel %vm2310_vm7, %v2306_v8, %v2561_v15 }
 0x4ee   :  { %2705 = vmatmul.mubr.msk.f32.vlgmr.msra.gmra.mrb[20].mxu1 %vm2217_vm5, %v2326_v21 }
 0x4ef   :  { %2707 = vmatprep.mubr.msk.f32.mxu1 %vm2217_vm5, %v2327_v23 }
 0x4f2   :  { %2708 = vmatmul.mubr.msk.f32.gmra.mrb[22].mxu1 %vm2217_vm5, %v2328_v33 }
 0x5c1   :  { %v2706_v51 = vpop.f32.mrb[20].mxu1 }
 0x5c2   :  { %2412 = vst.msk [vmem:[%s3459_s7 + $0x8] sm:$0xff] %vm2410_vm10, %v2706_v51  ;;  %v2391_v53 = vpop.f32.mrb[21].mxu1 }
 0x5c3   :  { %2411 = vst.msk [vmem:[%s3459_s7] sm:$0xff] %vm2410_vm10, %v2391_v53 }
 0x5c5   :  { %v2709_v35 = vpop.f32.mrb[22].mxu1 }
 0x5c6   :  { %2414 = vst.msk [vmem:[%s3459_s7 + $0x18] sm:$0xff] %vm2410_vm10, %v2709_v35  ;;  %v2401_v38 = vpop.f32.mrb[23].mxu1 }
 0x5c7   :  { %2413 = vst.msk [vmem:[%s3459_s7 + $0x10] sm:$0xff] %vm2410_vm10, %v2401_v38 }
 0x5c8   :  { %2419 = vsyncpa [#allocation3], 1 }

</bundles_post_ra>
